<compile_context>
chip_gen: v7x
topology: tpu7x:2x2x1
jax: 0.10.0
libtpu: 0.0.40
codegen_flags: <defaults>
</compile_context>

<pallas_src>
import functools

import jax
import jax.numpy as jnp
from jax.experimental import pallas as pl
from jax.experimental.pallas import tpu as pltpu


def _round_up(x, m):
    return ((x + m - 1) // m) * m


def _gru_kernel(emb_ref, mask_ref, wi_ref, wh_ref, bi_ref, bhn_ref,
                out_ref, hid_ref, gi_ref, *, batch, unroll):
    c = pl.program_id(0)
    TB, Hp = out_ref.shape              # (Tc*Bp, Hp) static block dims
    Bp = batch
    Tc = TB // Bp

    @pl.when(c == 0)
    def _():
        hid_ref[...] = jnp.zeros_like(hid_ref)

    # --- once per chunk, off the recurrent critical path ---------------------
    # Hoisted input-side projection (h-independent): one big MXU matmul.
    gi_ref[...] = (jnp.dot(emb_ref[...], wi_ref[...],
                           preferred_element_type=jnp.float32)
                   + bi_ref[...])

    wh = wh_ref[...]                    # (Hp, 3Hp) f32, VMEM-resident
    bhn = bhn_ref[...]                  # (1, Hp)   b_hn (must stay inside r*(.))

    # --- serial recurrence: only the h-dependent matmul remains inside -------
    def step(i, h):
        base = pl.multiple_of(i * Bp, 8)
        gi = gi_ref[pl.ds(base, Bp), :]         # (Bp, 3Hp) f32, precomputed
        m = mask_ref[pl.ds(base, Bp), :]        # (Bp, 1) float {0,1}
        gh = jnp.dot(h, wh, preferred_element_type=jnp.float32)
        r = jax.nn.sigmoid(gi[:, :Hp] + gh[:, :Hp])
        z = jax.nn.sigmoid(gi[:, Hp:2 * Hp] + gh[:, Hp:2 * Hp])
        n = jnp.tanh(gi[:, 2 * Hp:] + r * (gh[:, 2 * Hp:] + bhn))
        h_new = n + z * (h - n)                 # == (1-z)*n + z*h
        # packed-sequence semantics: emit output / update state only while t < len
        out_ref[pl.ds(base, Bp), :] = m * h_new
        return h + m * (h_new - h)

    # hid_ref has a constant block index -> VMEM-resident across the whole grid
    # and carries the hidden state between time chunks.
    hid_ref[...] = jax.lax.fori_loop(0, Tc, step, hid_ref[...], unroll=unroll)


def gru_pallas(embeddings, input_ids, lens, w_ih, w_hh, b_ih, b_hh, *,
               time_chunk=64, mxu_dtype=jnp.bfloat16):
    """embeddings: (V,H) f32, input_ids: (T,B) i32, lens: (B,),
    w_ih/w_hh: (3H,H), b_*: (3H,).  Returns (out (T,B,H), hidden (1,B,H))."""
    V, H = embeddings.shape
    T, B = input_ids.shape
    Hp = _round_up(H, 128)              # lane-dense feature dim
    Bp = _round_up(B, 8)                # sublane-dense batch dim
    Tc = int(min(time_chunk, T))        # timesteps per grid step
    n_chunks = -(-T // Tc)
    Tpad = n_chunks * Tc
    unroll = int(min(8, Tc))            # bounded unroll: LLO visibility, no spills

    # Embedding table padded/cast ONCE -> take() yields lane-dense mxu_dtype emb.
    emb_tbl = jnp.pad(embeddings, ((0, 0), (0, Hp - H))).astype(mxu_dtype)
    ids_p = jnp.pad(input_ids, ((0, Tpad - T), (0, Bp - B)))   # token 0; masked anyway
    lens_p = jnp.pad(lens.astype(jnp.int32), (0, Bp - B))      # padded rows: len 0
    emb2d = jnp.take(emb_tbl, ids_p, axis=0).reshape(Tpad * Bp, Hp)

    # Precomputed packed-sequence validity mask, flattened to (Tpad*Bp, 1).
    mask2d = (jnp.arange(Tpad, dtype=jnp.int32)[:, None] < lens_p[None, :]
              ).astype(jnp.float32).reshape(Tpad * Bp, 1)

    # Fused per-gate weights (PyTorch order r,z,n), transposed for x @ W^T,
    # zero-padded to Hp.  Wi in mxu_dtype (bf16 default); Wh / biases / h / all
    # gate math stay f32 (no per-step re-quantization of the recurrent state).
    def pad_w(w, dt):
        return jnp.pad(w.T, ((0, Hp - H), (0, Hp - H))).astype(dt)

    def pad_b(b):
        return jnp.pad(b.astype(jnp.float32), (0, Hp - H))

    wi_cat = jnp.concatenate([pad_w(w_ih[0:H], mxu_dtype),
                              pad_w(w_ih[H:2 * H], mxu_dtype),
                              pad_w(w_ih[2 * H:3 * H], mxu_dtype)], axis=1)
    wh_cat = jnp.concatenate([pad_w(w_hh[0:H], jnp.float32),
                              pad_w(w_hh[H:2 * H], jnp.float32),
                              pad_w(w_hh[2 * H:3 * H], jnp.float32)], axis=1)
    bi_cat = jnp.concatenate([pad_b(b_ih[0:H] + b_hh[0:H]),           # r biases
                              pad_b(b_ih[H:2 * H] + b_hh[H:2 * H]),   # z biases
                              pad_b(b_ih[2 * H:3 * H])]).reshape(1, 3 * Hp)
    bhn = pad_b(b_hh[2 * H:3 * H]).reshape(1, Hp)

    full = lambda shape: pl.BlockSpec(shape, lambda c: (0,) * len(shape))

    grid_spec = pltpu.PrefetchScalarGridSpec(
        num_scalar_prefetch=0,
        grid=(n_chunks,),
        in_specs=[
            pl.BlockSpec((Tc * Bp, Hp), lambda c: (c, 0)),    # emb time-chunk
            pl.BlockSpec((Tc * Bp, 1), lambda c: (c, 0)),     # validity mask chunk
            full((Hp, 3 * Hp)),                               # Wi_cat (resident)
            full((Hp, 3 * Hp)),                               # Wh_cat (resident)
            full((1, 3 * Hp)),                                # fused r/z/n biases
            full((1, Hp)),                                    # b_hn
        ],
        out_specs=[
            pl.BlockSpec((Tc * Bp, Hp), lambda c: (c, 0)),    # rnn_output chunk
            pl.BlockSpec((Bp, Hp), lambda c: (0, 0)),         # final hidden (carry)
        ],
        scratch_shapes=[
            pltpu.VMEM((Tc * Bp, 3 * Hp), jnp.float32),       # hoisted gi
        ],
    )

    out2d, hid = pl.pallas_call(
        functools.partial(_gru_kernel, batch=Bp, unroll=unroll),
        out_shape=(jax.ShapeDtypeStruct((Tpad * Bp, Hp), jnp.float32),
                   jax.ShapeDtypeStruct((Bp, Hp), jnp.float32)),
        grid_spec=grid_spec,
        compiler_params=pltpu.CompilerParams(
            dimension_semantics=("arbitrary",)),              # time is a recurrence
    )(emb2d, mask2d, wi_cat, wh_cat, bi_cat, bhn)

    # strip time/batch/feature padding; hidden -> (1, B, H) like PyTorch
    out = out2d.reshape(Tpad, Bp, Hp)[:T, :B, :H]
    return out, hid[None, :B, :H]


@functools.partial(jax.jit, static_argnames=("time_chunk", "mxu_dtype"))
def _encoder_forward_jit(input_ids, input_len, embeddings, w_ih, w_hh, b_ih,
                         b_hh, time_chunk, mxu_dtype):
    return gru_pallas(embeddings, input_ids, input_len, w_ih, w_hh, b_ih, b_hh,
                      time_chunk=time_chunk, mxu_dtype=mxu_dtype)


def encoder_forward(input_ids, input_len, embeddings, w_ih, w_hh, b_ih, b_hh, *,
                    time_chunk=64, mxu_dtype=jnp.bfloat16):
    # pad_packed_sequence contract: padded output length == max(input_len) == T
    assert int(jnp.max(input_len)) == input_ids.shape[0], \
        "max(input_len) must equal the time dimension of input_ids"
    return _encoder_forward_jit(input_ids, input_len, embeddings,
                                w_ih, w_hh, b_ih, b_hh,
                                time_chunk=time_chunk, mxu_dtype=mxu_dtype)


def gru_reference(emb, lens, w_ih, w_hh, b_ih, b_hh):
    """Pure-JAX reference mimicking nn.GRU over a packed (length-masked) batch."""
    T, B, H = emb.shape

    def step(h, inp):
        x, t = inp
        gi = x @ w_ih.T + b_ih
        gh = h @ w_hh.T + b_hh
        r = jax.nn.sigmoid(gi[:, :H] + gh[:, :H])
        z = jax.nn.sigmoid(gi[:, H:2 * H] + gh[:, H:2 * H])
        n = jnp.tanh(gi[:, 2 * H:] + r * gh[:, 2 * H:])
        h_new = (1.0 - z) * n + z * h
        mask = (t < lens)[:, None]
        return jnp.where(mask, h_new, h), jnp.where(mask, h_new, 0.0)

    h0 = jnp.zeros((B, H), jnp.float32)
    hN, outs = jax.lax.scan(step, h0, (emb, jnp.arange(T)))
    return outs, hN[None]


if __name__ == "__main__":
    V, H = 50, 32      # vocab size, hidden size (GRU input_size == hidden_size)
    T, B = 8, 2        # seq length (time-major), batch

    key = jax.random.PRNGKey(0)
    k_emb, k_ids, k_wih, k_whh, k_bih, k_bhh = jax.random.split(key, 6)

    embeddings = jax.random.normal(k_emb, (V, H), jnp.float32)
    input_ids = jax.random.randint(k_ids, (T, B), 0, V, jnp.int32)
    input_len = jnp.array([T, 5], jnp.int32)   # max length == T

    # deterministic PyTorch-style init: U(-1/sqrt(H), 1/sqrt(H))
    s = 1.0 / jnp.sqrt(jnp.float32(H))
    w_ih = jax.random.uniform(k_wih, (3 * H, H), jnp.float32, -s, s)
    w_hh = jax.random.uniform(k_whh, (3 * H, H), jnp.float32, -s, s)
    b_ih = jax.random.uniform(k_bih, (3 * H,), jnp.float32, -s, s)
    b_hh = jax.random.uniform(k_bhh, (3 * H,), jnp.float32, -s, s)

    emb = jnp.take(embeddings, input_ids, axis=0)
    ref_out, ref_hid = gru_reference(emb, input_len, w_ih, w_hh, b_ih, b_hh)

    # exact-precision path (all-f32 MXU inputs) -> tight tolerance
    out_f32, hid_f32 = encoder_forward(input_ids, input_len, embeddings,
                                       w_ih, w_hh, b_ih, b_hh,
                                       mxu_dtype=jnp.float32)
    out_f32 = jax.block_until_ready(out_f32)
    hid_f32 = jax.block_until_ready(hid_f32)
    assert out_f32.shape == (T, B, H) and hid_f32.shape == (1, B, H)
    assert jnp.allclose(out_f32, ref_out, rtol=1e-5, atol=1e-5)
    assert jnp.allclose(hid_f32, ref_hid, rtol=1e-5, atol=1e-5)

    # default path: bf16 input-side MXU operands, f32 recurrence / gate math
    out_bf, hid_bf = encoder_forward(input_ids, input_len, embeddings,
                                     w_ih, w_hh, b_ih, b_hh)
    out_bf = jax.block_until_ready(out_bf)
    hid_bf = jax.block_until_ready(hid_bf)
    assert out_bf.shape == (T, B, H) and hid_bf.shape == (1, B, H)
    assert float(jnp.max(jnp.abs(out_bf - ref_out))) < 5e-2
    assert float(jnp.max(jnp.abs(hid_bf - ref_hid))) < 5e-2

    print("KERNEL_OK")
</pallas_src>

<mosaic_0001>
module attributes {stable_mosaic.version = 11 : i64} {
  func.func @_gru_kernel(%arg0: i32, %arg1: memref<64x128xf32, #tpu.memory_space<vmem>>, %arg2: memref<64x1xf32, #tpu.memory_space<vmem>>, %arg3: memref<128x384xf32, #tpu.memory_space<vmem>>, %arg4: memref<128x384xf32, #tpu.memory_space<vmem>>, %arg5: memref<1x384xf32, #tpu.memory_space<vmem>>, %arg6: memref<1x128xf32, #tpu.memory_space<vmem>>, %arg7: memref<64x128xf32, #tpu.memory_space<vmem>>, %arg8: memref<8x128xf32, #tpu.memory_space<vmem>>, %arg9: memref<64x384xf32, #tpu.memory_space<vmem>>) attributes {dimension_semantics = [#tpu.dimension_semantics<arbitrary>], iteration_bounds = array<i64: 1>, scalar_prefetch = 0 : i64, scratch_operands = 1 : i64, tpu.core_type = #tpu.core_type<tc>, window_params = [{transform_indices = @transform_0, window_bounds = array<i64: 64, 128>}, {transform_indices = @transform_1, window_bounds = array<i64: 64, 1>}, {pipeline_mode = #tpu.pipeline_mode<synchronous>, transform_indices = @transform_2, window_bounds = array<i64: 128, 384>}, {pipeline_mode = #tpu.pipeline_mode<synchronous>, transform_indices = @transform_3, window_bounds = array<i64: 128, 384>}, {pipeline_mode = #tpu.pipeline_mode<synchronous>, transform_indices = @transform_4, window_bounds = array<i64: 1, 384>}, {pipeline_mode = #tpu.pipeline_mode<synchronous>, transform_indices = @transform_5, window_bounds = array<i64: 1, 128>}, {transform_indices = @transform_6, window_bounds = array<i64: 64, 128>}, {pipeline_mode = #tpu.pipeline_mode<synchronous>, transform_indices = @transform_7, window_bounds = array<i64: 8, 128>}]} {
    %c0_i32 = arith.constant 0 : i32
    %0 = arith.cmpi eq, %arg0, %c0_i32 : i32
    %1 = arith.extui %0 : i1 to i32
    %c0_i32_0 = arith.constant 0 : i32
    %2 = arith.cmpi ne, %1, %c0_i32_0 : i32
    scf.if %2 {
      %cst_73 = arith.constant 0.000000e+00 : f32
      %342 = vector.broadcast %cst_73 : f32 to vector<8x128xf32>
      %c0_74 = arith.constant 0 : index
      %c0_75 = arith.constant 0 : index
      %343 = vector.load %arg8[%c0_74, %c0_75] : memref<8x128xf32, #tpu.memory_space<vmem>>, vector<8x128xf32>
      tpu.vector_store %arg8[%c0_74, %c0_75], %342 {strides = array<i32>} : memref<8x128xf32, #tpu.memory_space<vmem>>, vector<8x128xf32>,
    } else {
    }
    %c0 = arith.constant 0 : index
    %c0_1 = arith.constant 0 : index
    %3 = vector.load %arg1[%c0, %c0_1] : memref<64x128xf32, #tpu.memory_space<vmem>>, vector<64x128xf32>
    %c0_2 = arith.constant 0 : index
    %c0_3 = arith.constant 0 : index
    %4 = vector.load %arg3[%c0_2, %c0_3] : memref<128x384xf32, #tpu.memory_space<vmem>>, vector<128x384xf32>
    %cst = arith.constant dense<0.000000e+00> : vector<64x384xf32>
    %5 = tpu.matmul %3, %4, %cst {dimension_numbers = #tpu.dot_dimension_numbers<[1], [0], [0], [1], [0, 0, 1, 1], [], []>} : vector<64x128xf32>, vector<128x384xf32>, vector<64x384xf32> -> vector<64x384xf32>
    %c0_4 = arith.constant 0 : index
    %c0_5 = arith.constant 0 : index
    %6 = vector.load %arg5[%c0_4, %c0_5] : memref<1x384xf32, #tpu.memory_space<vmem>>, vector<1x384xf32>
    %7 = vector.broadcast %6 : vector<1x384xf32> to vector<64x384xf32>
    %8 = arith.addf %5, %7 : vector<64x384xf32>
    %c0_6 = arith.constant 0 : index
    %c0_7 = arith.constant 0 : index
    %9 = vector.load %arg9[%c0_6, %c0_7] : memref<64x384xf32, #tpu.memory_space<vmem>>, vector<64x384xf32>
    tpu.vector_store %arg9[%c0_6, %c0_7], %8 {strides = array<i32>} : memref<64x384xf32, #tpu.memory_space<vmem>>, vector<64x384xf32>,
    %c0_8 = arith.constant 0 : index
    %c0_9 = arith.constant 0 : index
    %10 = vector.load %arg4[%c0_8, %c0_9] : memref<128x384xf32, #tpu.memory_space<vmem>>, vector<128x384xf32>
    %c0_10 = arith.constant 0 : index
    %c0_11 = arith.constant 0 : index
    %11 = vector.load %arg6[%c0_10, %c0_11] : memref<1x128xf32, #tpu.memory_space<vmem>>, vector<1x128xf32>
    %c0_12 = arith.constant 0 : index
    %c0_13 = arith.constant 0 : index
    %12 = vector.load %arg8[%c0_12, %c0_13] : memref<8x128xf32, #tpu.memory_space<vmem>>, vector<8x128xf32>
    %c0_i32_14 = arith.constant 0 : i32
    %c8_i32 = arith.constant 8 : i32
    %13 = arith.muli %c0_i32_14, %c8_i32 : i32
    %14 = tpu.assume_multiple %13, 8 : i32
    %15 = arith.index_cast %14 : i32 to index
    %c0_15 = arith.constant 0 : index
    %16 = vector.load %arg9[%15, %c0_15] : memref<64x384xf32, #tpu.memory_space<vmem>>, vector<8x384xf32>
    %17 = arith.index_cast %14 : i32 to index
    %c0_16 = arith.constant 0 : index
    %18 = vector.load %arg2[%17, %c0_16] : memref<64x1xf32, #tpu.memory_space<vmem>>, vector<8x1xf32>
    %cst_17 = arith.constant dense<0.000000e+00> : vector<8x384xf32>
    %19 = tpu.matmul %12, %10, %cst_17 {dimension_numbers = #tpu.dot_dimension_numbers<[1], [0], [0], [1], [0, 0, 1, 1], [], []>} : vector<8x128xf32>, vector<128x384xf32>, vector<8x384xf32> -> vector<8x384xf32>
    %20 = vector.extract_strided_slice %16 {offsets = [0, 0], sizes = [8, 128], strides = [1, 1]} : vector<8x384xf32> to vector<8x128xf32>
    %21 = vector.extract_strided_slice %19 {offsets = [0, 0], sizes = [8, 128], strides = [1, 1]} : vector<8x384xf32> to vector<8x128xf32>
    %22 = arith.addf %20, %21 : vector<8x128xf32>
    %23 = arith.negf %22 : vector<8x128xf32>
    %24 = math.exp %23 : vector<8x128xf32>
    %cst_18 = arith.constant 1.000000e+00 : f32
    %25 = vector.broadcast %cst_18 : f32 to vector<8x128xf32>
    %26 = arith.addf %25, %24 : vector<8x128xf32>
    %27 = arith.divf %25, %26 : vector<8x128xf32>
    %28 = vector.extract_strided_slice %16 {offsets = [0, 128], sizes = [8, 128], strides = [1, 1]} : vector<8x384xf32> to vector<8x128xf32>
    %29 = vector.extract_strided_slice %19 {offsets = [0, 128], sizes = [8, 128], strides = [1, 1]} : vector<8x384xf32> to vector<8x128xf32>
    %30 = arith.addf %28, %29 : vector<8x128xf32>
    %31 = arith.negf %30 : vector<8x128xf32>
    %32 = math.exp %31 : vector<8x128xf32>
    %cst_19 = arith.constant 1.000000e+00 : f32
    %33 = vector.broadcast %cst_19 : f32 to vector<8x128xf32>
    %34 = arith.addf %33, %32 : vector<8x128xf32>
    %35 = arith.divf %33, %34 : vector<8x128xf32>
    %36 = vector.extract_strided_slice %16 {offsets = [0, 256], sizes = [8, 128], strides = [1, 1]} : vector<8x384xf32> to vector<8x128xf32>
    %37 = vector.extract_strided_slice %19 {offsets = [0, 256], sizes = [8, 128], strides = [1, 1]} : vector<8x384xf32> to vector<8x128xf32>
    %38 = vector.broadcast %11 : vector<1x128xf32> to vector<8x128xf32>
    %39 = arith.addf %37, %38 : vector<8x128xf32>
    %40 = arith.mulf %27, %39 : vector<8x128xf32>
    %41 = arith.addf %36, %40 : vector<8x128xf32>
    %42 = math.tanh %41 : vector<8x128xf32>
    %43 = arith.subf %12, %42 : vector<8x128xf32>
    %44 = arith.mulf %35, %43 : vector<8x128xf32>
    %45 = arith.addf %42, %44 : vector<8x128xf32>
    %46 = vector.broadcast %18 : vector<8x1xf32> to vector<8x128xf32>
    %47 = arith.mulf %46, %45 : vector<8x128xf32>
    %48 = arith.index_cast %14 : i32 to index
    %c0_20 = arith.constant 0 : index
    %49 = vector.load %arg7[%48, %c0_20] : memref<64x128xf32, #tpu.memory_space<vmem>>, vector<8x128xf32>
    tpu.vector_store %arg7[%48, %c0_20], %47 {strides = array<i32>} : memref<64x128xf32, #tpu.memory_space<vmem>>, vector<8x128xf32>,
    %50 = arith.subf %45, %12 : vector<8x128xf32>
    %51 = vector.broadcast %18 : vector<8x1xf32> to vector<8x128xf32>
    %52 = arith.mulf %51, %50 : vector<8x128xf32>
    %53 = arith.addf %12, %52 : vector<8x128xf32>
    %c1_i32 = arith.constant 1 : i32
    %c8_i32_21 = arith.constant 8 : i32
    %54 = arith.muli %c1_i32, %c8_i32_21 : i32
    %55 = tpu.assume_multiple %54, 8 : i32
    %56 = arith.index_cast %55 : i32 to index
    %c0_22 = arith.constant 0 : index
    %57 = vector.load %arg9[%56, %c0_22] : memref<64x384xf32, #tpu.memory_space<vmem>>, vector<8x384xf32>
    %58 = arith.index_cast %55 : i32 to index
    %c0_23 = arith.constant 0 : index
    %59 = vector.load %arg2[%58, %c0_23] : memref<64x1xf32, #tpu.memory_space<vmem>>, vector<8x1xf32>
    %cst_24 = arith.constant dense<0.000000e+00> : vector<8x384xf32>
    %60 = tpu.matmul %53, %10, %cst_24 {dimension_numbers = #tpu.dot_dimension_numbers<[1], [0], [0], [1], [0, 0, 1, 1], [], []>} : vector<8x128xf32>, vector<128x384xf32>, vector<8x384xf32> -> vector<8x384xf32>
    %61 = vector.extract_strided_slice %57 {offsets = [0, 0], sizes = [8, 128], strides = [1, 1]} : vector<8x384xf32> to vector<8x128xf32>
    %62 = vector.extract_strided_slice %60 {offsets = [0, 0], sizes = [8, 128], strides = [1, 1]} : vector<8x384xf32> to vector<8x128xf32>
    %63 = arith.addf %61, %62 : vector<8x128xf32>
    %64 = arith.negf %63 : vector<8x128xf32>
    %65 = math.exp %64 : vector<8x128xf32>
    %cst_25 = arith.constant 1.000000e+00 : f32
    %66 = vector.broadcast %cst_25 : f32 to vector<8x128xf32>
    %67 = arith.addf %66, %65 : vector<8x128xf32>
    %68 = arith.divf %66, %67 : vector<8x128xf32>
    %69 = vector.extract_strided_slice %57 {offsets = [0, 128], sizes = [8, 128], strides = [1, 1]} : vector<8x384xf32> to vector<8x128xf32>
    %70 = vector.extract_strided_slice %60 {offsets = [0, 128], sizes = [8, 128], strides = [1, 1]} : vector<8x384xf32> to vector<8x128xf32>
    %71 = arith.addf %69, %70 : vector<8x128xf32>
    %72 = arith.negf %71 : vector<8x128xf32>
    %73 = math.exp %72 : vector<8x128xf32>
    %cst_26 = arith.constant 1.000000e+00 : f32
    %74 = vector.broadcast %cst_26 : f32 to vector<8x128xf32>
    %75 = arith.addf %74, %73 : vector<8x128xf32>
    %76 = arith.divf %74, %75 : vector<8x128xf32>
    %77 = vector.extract_strided_slice %57 {offsets = [0, 256], sizes = [8, 128], strides = [1, 1]} : vector<8x384xf32> to vector<8x128xf32>
    %78 = vector.extract_strided_slice %60 {offsets = [0, 256], sizes = [8, 128], strides = [1, 1]} : vector<8x384xf32> to vector<8x128xf32>
    %79 = vector.broadcast %11 : vector<1x128xf32> to vector<8x128xf32>
    %80 = arith.addf %78, %79 : vector<8x128xf32>
    %81 = arith.mulf %68, %80 : vector<8x128xf32>
    %82 = arith.addf %77, %81 : vector<8x128xf32>
    %83 = math.tanh %82 : vector<8x128xf32>
    %84 = arith.subf %53, %83 : vector<8x128xf32>
    %85 = arith.mulf %76, %84 : vector<8x128xf32>
    %86 = arith.addf %83, %85 : vector<8x128xf32>
    %87 = vector.broadcast %59 : vector<8x1xf32> to vector<8x128xf32>
    %88 = arith.mulf %87, %86 : vector<8x128xf32>
    %89 = arith.index_cast %55 : i32 to index
    %c0_27 = arith.constant 0 : index
    %90 = vector.load %arg7[%89, %c0_27] : memref<64x128xf32, #tpu.memory_space<vmem>>, vector<8x128xf32>
    tpu.vector_store %arg7[%89, %c0_27], %88 {strides = array<i32>} : memref<64x128xf32, #tpu.memory_space<vmem>>, vector<8x128xf32>,
    %91 = arith.subf %86, %53 : vector<8x128xf32>
    %92 = vector.broadcast %59 : vector<8x1xf32> to vector<8x128xf32>
    %93 = arith.mulf %92, %91 : vector<8x128xf32>
    %94 = arith.addf %53, %93 : vector<8x128xf32>
    %c2_i32 = arith.constant 2 : i32
    %c8_i32_28 = arith.constant 8 : i32
    %95 = arith.muli %c2_i32, %c8_i32_28 : i32
    %96 = tpu.assume_multiple %95, 8 : i32
    %97 = arith.index_cast %96 : i32 to index
    %c0_29 = arith.constant 0 : index
    %98 = vector.load %arg9[%97, %c0_29] : memref<64x384xf32, #tpu.memory_space<vmem>>, vector<8x384xf32>
    %99 = arith.index_cast %96 : i32 to index
    %c0_30 = arith.constant 0 : index
    %100 = vector.load %arg2[%99, %c0_30] : memref<64x1xf32, #tpu.memory_space<vmem>>, vector<8x1xf32>
    %cst_31 = arith.constant dense<0.000000e+00> : vector<8x384xf32>
    %101 = tpu.matmul %94, %10, %cst_31 {dimension_numbers = #tpu.dot_dimension_numbers<[1], [0], [0], [1], [0, 0, 1, 1], [], []>} : vector<8x128xf32>, vector<128x384xf32>, vector<8x384xf32> -> vector<8x384xf32>
    %102 = vector.extract_strided_slice %98 {offsets = [0, 0], sizes = [8, 128], strides = [1, 1]} : vector<8x384xf32> to vector<8x128xf32>
    %103 = vector.extract_strided_slice %101 {offsets = [0, 0], sizes = [8, 128], strides = [1, 1]} : vector<8x384xf32> to vector<8x128xf32>
    %104 = arith.addf %102, %103 : vector<8x128xf32>
    %105 = arith.negf %104 : vector<8x128xf32>
    %106 = math.exp %105 : vector<8x128xf32>
    %cst_32 = arith.constant 1.000000e+00 : f32
    %107 = vector.broadcast %cst_32 : f32 to vector<8x128xf32>
    %108 = arith.addf %107, %106 : vector<8x128xf32>
    %109 = arith.divf %107, %108 : vector<8x128xf32>
    %110 = vector.extract_strided_slice %98 {offsets = [0, 128], sizes = [8, 128], strides = [1, 1]} : vector<8x384xf32> to vector<8x128xf32>
    %111 = vector.extract_strided_slice %101 {offsets = [0, 128], sizes = [8, 128], strides = [1, 1]} : vector<8x384xf32> to vector<8x128xf32>
    %112 = arith.addf %110, %111 : vector<8x128xf32>
    %113 = arith.negf %112 : vector<8x128xf32>
    %114 = math.exp %113 : vector<8x128xf32>
    %cst_33 = arith.constant 1.000000e+00 : f32
    %115 = vector.broadcast %cst_33 : f32 to vector<8x128xf32>
    %116 = arith.addf %115, %114 : vector<8x128xf32>
    %117 = arith.divf %115, %116 : vector<8x128xf32>
    %118 = vector.extract_strided_slice %98 {offsets = [0, 256], sizes = [8, 128], strides = [1, 1]} : vector<8x384xf32> to vector<8x128xf32>
    %119 = vector.extract_strided_slice %101 {offsets = [0, 256], sizes = [8, 128], strides = [1, 1]} : vector<8x384xf32> to vector<8x128xf32>
    %120 = vector.broadcast %11 : vector<1x128xf32> to vector<8x128xf32>
    %121 = arith.addf %119, %120 : vector<8x128xf32>
    %122 = arith.mulf %109, %121 : vector<8x128xf32>
    %123 = arith.addf %118, %122 : vector<8x128xf32>
    %124 = math.tanh %123 : vector<8x128xf32>
    %125 = arith.subf %94, %124 : vector<8x128xf32>
    %126 = arith.mulf %117, %125 : vector<8x128xf32>
    %127 = arith.addf %124, %126 : vector<8x128xf32>
    %128 = vector.broadcast %100 : vector<8x1xf32> to vector<8x128xf32>
    %129 = arith.mulf %128, %127 : vector<8x128xf32>
    %130 = arith.index_cast %96 : i32 to index
    %c0_34 = arith.constant 0 : index
    %131 = vector.load %arg7[%130, %c0_34] : memref<64x128xf32, #tpu.memory_space<vmem>>, vector<8x128xf32>
    tpu.vector_store %arg7[%130, %c0_34], %129 {strides = array<i32>} : memref<64x128xf32, #tpu.memory_space<vmem>>, vector<8x128xf32>,
    %132 = arith.subf %127, %94 : vector<8x128xf32>
    %133 = vector.broadcast %100 : vector<8x1xf32> to vector<8x128xf32>
    %134 = arith.mulf %133, %132 : vector<8x128xf32>
    %135 = arith.addf %94, %134 : vector<8x128xf32>
    %c3_i32 = arith.constant 3 : i32
    %c8_i32_35 = arith.constant 8 : i32
    %136 = arith.muli %c3_i32, %c8_i32_35 : i32
    %137 = tpu.assume_multiple %136, 8 : i32
    %138 = arith.index_cast %137 : i32 to index
    %c0_36 = arith.constant 0 : index
    %139 = vector.load %arg9[%138, %c0_36] : memref<64x384xf32, #tpu.memory_space<vmem>>, vector<8x384xf32>
    %140 = arith.index_cast %137 : i32 to index
    %c0_37 = arith.constant 0 : index
    %141 = vector.load %arg2[%140, %c0_37] : memref<64x1xf32, #tpu.memory_space<vmem>>, vector<8x1xf32>
    %cst_38 = arith.constant dense<0.000000e+00> : vector<8x384xf32>
    %142 = tpu.matmul %135, %10, %cst_38 {dimension_numbers = #tpu.dot_dimension_numbers<[1], [0], [0], [1], [0, 0, 1, 1], [], []>} : vector<8x128xf32>, vector<128x384xf32>, vector<8x384xf32> -> vector<8x384xf32>
    %143 = vector.extract_strided_slice %139 {offsets = [0, 0], sizes = [8, 128], strides = [1, 1]} : vector<8x384xf32> to vector<8x128xf32>
    %144 = vector.extract_strided_slice %142 {offsets = [0, 0], sizes = [8, 128], strides = [1, 1]} : vector<8x384xf32> to vector<8x128xf32>
    %145 = arith.addf %143, %144 : vector<8x128xf32>
    %146 = arith.negf %145 : vector<8x128xf32>
    %147 = math.exp %146 : vector<8x128xf32>
    %cst_39 = arith.constant 1.000000e+00 : f32
    %148 = vector.broadcast %cst_39 : f32 to vector<8x128xf32>
    %149 = arith.addf %148, %147 : vector<8x128xf32>
    %150 = arith.divf %148, %149 : vector<8x128xf32>
    %151 = vector.extract_strided_slice %139 {offsets = [0, 128], sizes = [8, 128], strides = [1, 1]} : vector<8x384xf32> to vector<8x128xf32>
    %152 = vector.extract_strided_slice %142 {offsets = [0, 128], sizes = [8, 128], strides = [1, 1]} : vector<8x384xf32> to vector<8x128xf32>
    %153 = arith.addf %151, %152 : vector<8x128xf32>
    %154 = arith.negf %153 : vector<8x128xf32>
    %155 = math.exp %154 : vector<8x128xf32>
    %cst_40 = arith.constant 1.000000e+00 : f32
    %156 = vector.broadcast %cst_40 : f32 to vector<8x128xf32>
    %157 = arith.addf %156, %155 : vector<8x128xf32>
    %158 = arith.divf %156, %157 : vector<8x128xf32>
    %159 = vector.extract_strided_slice %139 {offsets = [0, 256], sizes = [8, 128], strides = [1, 1]} : vector<8x384xf32> to vector<8x128xf32>
    %160 = vector.extract_strided_slice %142 {offsets = [0, 256], sizes = [8, 128], strides = [1, 1]} : vector<8x384xf32> to vector<8x128xf32>
    %161 = vector.broadcast %11 : vector<1x128xf32> to vector<8x128xf32>
    %162 = arith.addf %160, %161 : vector<8x128xf32>
    %163 = arith.mulf %150, %162 : vector<8x128xf32>
    %164 = arith.addf %159, %163 : vector<8x128xf32>
    %165 = math.tanh %164 : vector<8x128xf32>
    %166 = arith.subf %135, %165 : vector<8x128xf32>
    %167 = arith.mulf %158, %166 : vector<8x128xf32>
    %168 = arith.addf %165, %167 : vector<8x128xf32>
    %169 = vector.broadcast %141 : vector<8x1xf32> to vector<8x128xf32>
    %170 = arith.mulf %169, %168 : vector<8x128xf32>
    %171 = arith.index_cast %137 : i32 to index
    %c0_41 = arith.constant 0 : index
    %172 = vector.load %arg7[%171, %c0_41] : memref<64x128xf32, #tpu.memory_space<vmem>>, vector<8x128xf32>
    tpu.vector_store %arg7[%171, %c0_41], %170 {strides = array<i32>} : memref<64x128xf32, #tpu.memory_space<vmem>>, vector<8x128xf32>,
    %173 = arith.subf %168, %135 : vector<8x128xf32>
    %174 = vector.broadcast %141 : vector<8x1xf32> to vector<8x128xf32>
    %175 = arith.mulf %174, %173 : vector<8x128xf32>
    %176 = arith.addf %135, %175 : vector<8x128xf32>
    %c4_i32 = arith.constant 4 : i32
    %c8_i32_42 = arith.constant 8 : i32
    %177 = arith.muli %c4_i32, %c8_i32_42 : i32
    %178 = tpu.assume_multiple %177, 8 : i32
    %179 = arith.index_cast %178 : i32 to index
    %c0_43 = arith.constant 0 : index
    %180 = vector.load %arg9[%179, %c0_43] : memref<64x384xf32, #tpu.memory_space<vmem>>, vector<8x384xf32>
    %181 = arith.index_cast %178 : i32 to index
    %c0_44 = arith.constant 0 : index
    %182 = vector.load %arg2[%181, %c0_44] : memref<64x1xf32, #tpu.memory_space<vmem>>, vector<8x1xf32>
    %cst_45 = arith.constant dense<0.000000e+00> : vector<8x384xf32>
    %183 = tpu.matmul %176, %10, %cst_45 {dimension_numbers = #tpu.dot_dimension_numbers<[1], [0], [0], [1], [0, 0, 1, 1], [], []>} : vector<8x128xf32>, vector<128x384xf32>, vector<8x384xf32> -> vector<8x384xf32>
    %184 = vector.extract_strided_slice %180 {offsets = [0, 0], sizes = [8, 128], strides = [1, 1]} : vector<8x384xf32> to vector<8x128xf32>
    %185 = vector.extract_strided_slice %183 {offsets = [0, 0], sizes = [8, 128], strides = [1, 1]} : vector<8x384xf32> to vector<8x128xf32>
    %186 = arith.addf %184, %185 : vector<8x128xf32>
    %187 = arith.negf %186 : vector<8x128xf32>
    %188 = math.exp %187 : vector<8x128xf32>
    %cst_46 = arith.constant 1.000000e+00 : f32
    %189 = vector.broadcast %cst_46 : f32 to vector<8x128xf32>
    %190 = arith.addf %189, %188 : vector<8x128xf32>
    %191 = arith.divf %189, %190 : vector<8x128xf32>
    %192 = vector.extract_strided_slice %180 {offsets = [0, 128], sizes = [8, 128], strides = [1, 1]} : vector<8x384xf32> to vector<8x128xf32>
    %193 = vector.extract_strided_slice %183 {offsets = [0, 128], sizes = [8, 128], strides = [1, 1]} : vector<8x384xf32> to vector<8x128xf32>
    %194 = arith.addf %192, %193 : vector<8x128xf32>
    %195 = arith.negf %194 : vector<8x128xf32>
    %196 = math.exp %195 : vector<8x128xf32>
    %cst_47 = arith.constant 1.000000e+00 : f32
    %197 = vector.broadcast %cst_47 : f32 to vector<8x128xf32>
    %198 = arith.addf %197, %196 : vector<8x128xf32>
    %199 = arith.divf %197, %198 : vector<8x128xf32>
    %200 = vector.extract_strided_slice %180 {offsets = [0, 256], sizes = [8, 128], strides = [1, 1]} : vector<8x384xf32> to vector<8x128xf32>
    %201 = vector.extract_strided_slice %183 {offsets = [0, 256], sizes = [8, 128], strides = [1, 1]} : vector<8x384xf32> to vector<8x128xf32>
    %202 = vector.broadcast %11 : vector<1x128xf32> to vector<8x128xf32>
    %203 = arith.addf %201, %202 : vector<8x128xf32>
    %204 = arith.mulf %191, %203 : vector<8x128xf32>
    %205 = arith.addf %200, %204 : vector<8x128xf32>
    %206 = math.tanh %205 : vector<8x128xf32>
    %207 = arith.subf %176, %206 : vector<8x128xf32>
    %208 = arith.mulf %199, %207 : vector<8x128xf32>
    %209 = arith.addf %206, %208 : vector<8x128xf32>
    %210 = vector.broadcast %182 : vector<8x1xf32> to vector<8x128xf32>
    %211 = arith.mulf %210, %209 : vector<8x128xf32>
    %212 = arith.index_cast %178 : i32 to index
    %c0_48 = arith.constant 0 : index
    %213 = vector.load %arg7[%212, %c0_48] : memref<64x128xf32, #tpu.memory_space<vmem>>, vector<8x128xf32>
    tpu.vector_store %arg7[%212, %c0_48], %211 {strides = array<i32>} : memref<64x128xf32, #tpu.memory_space<vmem>>, vector<8x128xf32>,
    %214 = arith.subf %209, %176 : vector<8x128xf32>
    %215 = vector.broadcast %182 : vector<8x1xf32> to vector<8x128xf32>
    %216 = arith.mulf %215, %214 : vector<8x128xf32>
    %217 = arith.addf %176, %216 : vector<8x128xf32>
    %c5_i32 = arith.constant 5 : i32
    %c8_i32_49 = arith.constant 8 : i32
    %218 = arith.muli %c5_i32, %c8_i32_49 : i32
    %219 = tpu.assume_multiple %218, 8 : i32
    %220 = arith.index_cast %219 : i32 to index
    %c0_50 = arith.constant 0 : index
    %221 = vector.load %arg9[%220, %c0_50] : memref<64x384xf32, #tpu.memory_space<vmem>>, vector<8x384xf32>
    %222 = arith.index_cast %219 : i32 to index
    %c0_51 = arith.constant 0 : index
    %223 = vector.load %arg2[%222, %c0_51] : memref<64x1xf32, #tpu.memory_space<vmem>>, vector<8x1xf32>
    %cst_52 = arith.constant dense<0.000000e+00> : vector<8x384xf32>
    %224 = tpu.matmul %217, %10, %cst_52 {dimension_numbers = #tpu.dot_dimension_numbers<[1], [0], [0], [1], [0, 0, 1, 1], [], []>} : vector<8x128xf32>, vector<128x384xf32>, vector<8x384xf32> -> vector<8x384xf32>
    %225 = vector.extract_strided_slice %221 {offsets = [0, 0], sizes = [8, 128], strides = [1, 1]} : vector<8x384xf32> to vector<8x128xf32>
    %226 = vector.extract_strided_slice %224 {offsets = [0, 0], sizes = [8, 128], strides = [1, 1]} : vector<8x384xf32> to vector<8x128xf32>
    %227 = arith.addf %225, %226 : vector<8x128xf32>
    %228 = arith.negf %227 : vector<8x128xf32>
    %229 = math.exp %228 : vector<8x128xf32>
    %cst_53 = arith.constant 1.000000e+00 : f32
    %230 = vector.broadcast %cst_53 : f32 to vector<8x128xf32>
    %231 = arith.addf %230, %229 : vector<8x128xf32>
    %232 = arith.divf %230, %231 : vector<8x128xf32>
    %233 = vector.extract_strided_slice %221 {offsets = [0, 128], sizes = [8, 128], strides = [1, 1]} : vector<8x384xf32> to vector<8x128xf32>
    %234 = vector.extract_strided_slice %224 {offsets = [0, 128], sizes = [8, 128], strides = [1, 1]} : vector<8x384xf32> to vector<8x128xf32>
    %235 = arith.addf %233, %234 : vector<8x128xf32>
    %236 = arith.negf %235 : vector<8x128xf32>
    %237 = math.exp %236 : vector<8x128xf32>
    %cst_54 = arith.constant 1.000000e+00 : f32
    %238 = vector.broadcast %cst_54 : f32 to vector<8x128xf32>
    %239 = arith.addf %238, %237 : vector<8x128xf32>
    %240 = arith.divf %238, %239 : vector<8x128xf32>
    %241 = vector.extract_strided_slice %221 {offsets = [0, 256], sizes = [8, 128], strides = [1, 1]} : vector<8x384xf32> to vector<8x128xf32>
    %242 = vector.extract_strided_slice %224 {offsets = [0, 256], sizes = [8, 128], strides = [1, 1]} : vector<8x384xf32> to vector<8x128xf32>
    %243 = vector.broadcast %11 : vector<1x128xf32> to vector<8x128xf32>
    %244 = arith.addf %242, %243 : vector<8x128xf32>
    %245 = arith.mulf %232, %244 : vector<8x128xf32>
    %246 = arith.addf %241, %245 : vector<8x128xf32>
    %247 = math.tanh %246 : vector<8x128xf32>
    %248 = arith.subf %217, %247 : vector<8x128xf32>
    %249 = arith.mulf %240, %248 : vector<8x128xf32>
    %250 = arith.addf %247, %249 : vector<8x128xf32>
    %251 = vector.broadcast %223 : vector<8x1xf32> to vector<8x128xf32>
    %252 = arith.mulf %251, %250 : vector<8x128xf32>
    %253 = arith.index_cast %219 : i32 to index
    %c0_55 = arith.constant 0 : index
    %254 = vector.load %arg7[%253, %c0_55] : memref<64x128xf32, #tpu.memory_space<vmem>>, vector<8x128xf32>
    tpu.vector_store %arg7[%253, %c0_55], %252 {strides = array<i32>} : memref<64x128xf32, #tpu.memory_space<vmem>>, vector<8x128xf32>,
    %255 = arith.subf %250, %217 : vector<8x128xf32>
    %256 = vector.broadcast %223 : vector<8x1xf32> to vector<8x128xf32>
    %257 = arith.mulf %256, %255 : vector<8x128xf32>
    %258 = arith.addf %217, %257 : vector<8x128xf32>
    %c6_i32 = arith.constant 6 : i32
    %c8_i32_56 = arith.constant 8 : i32
    %259 = arith.muli %c6_i32, %c8_i32_56 : i32
    %260 = tpu.assume_multiple %259, 8 : i32
    %261 = arith.index_cast %260 : i32 to index
    %c0_57 = arith.constant 0 : index
    %262 = vector.load %arg9[%261, %c0_57] : memref<64x384xf32, #tpu.memory_space<vmem>>, vector<8x384xf32>
    %263 = arith.index_cast %260 : i32 to index
    %c0_58 = arith.constant 0 : index
    %264 = vector.load %arg2[%263, %c0_58] : memref<64x1xf32, #tpu.memory_space<vmem>>, vector<8x1xf32>
    %cst_59 = arith.constant dense<0.000000e+00> : vector<8x384xf32>
    %265 = tpu.matmul %258, %10, %cst_59 {dimension_numbers = #tpu.dot_dimension_numbers<[1], [0], [0], [1], [0, 0, 1, 1], [], []>} : vector<8x128xf32>, vector<128x384xf32>, vector<8x384xf32> -> vector<8x384xf32>
    %266 = vector.extract_strided_slice %262 {offsets = [0, 0], sizes = [8, 128], strides = [1, 1]} : vector<8x384xf32> to vector<8x128xf32>
    %267 = vector.extract_strided_slice %265 {offsets = [0, 0], sizes = [8, 128], strides = [1, 1]} : vector<8x384xf32> to vector<8x128xf32>
    %268 = arith.addf %266, %267 : vector<8x128xf32>
    %269 = arith.negf %268 : vector<8x128xf32>
    %270 = math.exp %269 : vector<8x128xf32>
    %cst_60 = arith.constant 1.000000e+00 : f32
    %271 = vector.broadcast %cst_60 : f32 to vector<8x128xf32>
    %272 = arith.addf %271, %270 : vector<8x128xf32>
    %273 = arith.divf %271, %272 : vector<8x128xf32>
    %274 = vector.extract_strided_slice %262 {offsets = [0, 128], sizes = [8, 128], strides = [1, 1]} : vector<8x384xf32> to vector<8x128xf32>
    %275 = vector.extract_strided_slice %265 {offsets = [0, 128], sizes = [8, 128], strides = [1, 1]} : vector<8x384xf32> to vector<8x128xf32>
    %276 = arith.addf %274, %275 : vector<8x128xf32>
    %277 = arith.negf %276 : vector<8x128xf32>
    %278 = math.exp %277 : vector<8x128xf32>
    %cst_61 = arith.constant 1.000000e+00 : f32
    %279 = vector.broadcast %cst_61 : f32 to vector<8x128xf32>
    %280 = arith.addf %279, %278 : vector<8x128xf32>
    %281 = arith.divf %279, %280 : vector<8x128xf32>
    %282 = vector.extract_strided_slice %262 {offsets = [0, 256], sizes = [8, 128], strides = [1, 1]} : vector<8x384xf32> to vector<8x128xf32>
    %283 = vector.extract_strided_slice %265 {offsets = [0, 256], sizes = [8, 128], strides = [1, 1]} : vector<8x384xf32> to vector<8x128xf32>
    %284 = vector.broadcast %11 : vector<1x128xf32> to vector<8x128xf32>
    %285 = arith.addf %283, %284 : vector<8x128xf32>
    %286 = arith.mulf %273, %285 : vector<8x128xf32>
    %287 = arith.addf %282, %286 : vector<8x128xf32>
    %288 = math.tanh %287 : vector<8x128xf32>
    %289 = arith.subf %258, %288 : vector<8x128xf32>
    %290 = arith.mulf %281, %289 : vector<8x128xf32>
    %291 = arith.addf %288, %290 : vector<8x128xf32>
    %292 = vector.broadcast %264 : vector<8x1xf32> to vector<8x128xf32>
    %293 = arith.mulf %292, %291 : vector<8x128xf32>
    %294 = arith.index_cast %260 : i32 to index
    %c0_62 = arith.constant 0 : index
    %295 = vector.load %arg7[%294, %c0_62] : memref<64x128xf32, #tpu.memory_space<vmem>>, vector<8x128xf32>
    tpu.vector_store %arg7[%294, %c0_62], %293 {strides = array<i32>} : memref<64x128xf32, #tpu.memory_space<vmem>>, vector<8x128xf32>,
    %296 = arith.subf %291, %258 : vector<8x128xf32>
    %297 = vector.broadcast %264 : vector<8x1xf32> to vector<8x128xf32>
    %298 = arith.mulf %297, %296 : vector<8x128xf32>
    %299 = arith.addf %258, %298 : vector<8x128xf32>
    %c7_i32 = arith.constant 7 : i32
    %c8_i32_63 = arith.constant 8 : i32
    %300 = arith.muli %c7_i32, %c8_i32_63 : i32
    %301 = tpu.assume_multiple %300, 8 : i32
    %302 = arith.index_cast %301 : i32 to index
    %c0_64 = arith.constant 0 : index
    %303 = vector.load %arg9[%302, %c0_64] : memref<64x384xf32, #tpu.memory_space<vmem>>, vector<8x384xf32>
    %304 = arith.index_cast %301 : i32 to index
    %c0_65 = arith.constant 0 : index
    %305 = vector.load %arg2[%304, %c0_65] : memref<64x1xf32, #tpu.memory_space<vmem>>, vector<8x1xf32>
    %cst_66 = arith.constant dense<0.000000e+00> : vector<8x384xf32>
    %306 = tpu.matmul %299, %10, %cst_66 {dimension_numbers = #tpu.dot_dimension_numbers<[1], [0], [0], [1], [0, 0, 1, 1], [], []>} : vector<8x128xf32>, vector<128x384xf32>, vector<8x384xf32> -> vector<8x384xf32>
    %307 = vector.extract_strided_slice %303 {offsets = [0, 0], sizes = [8, 128], strides = [1, 1]} : vector<8x384xf32> to vector<8x128xf32>
    %308 = vector.extract_strided_slice %306 {offsets = [0, 0], sizes = [8, 128], strides = [1, 1]} : vector<8x384xf32> to vector<8x128xf32>
    %309 = arith.addf %307, %308 : vector<8x128xf32>
    %310 = arith.negf %309 : vector<8x128xf32>
    %311 = math.exp %310 : vector<8x128xf32>
    %cst_67 = arith.constant 1.000000e+00 : f32
    %312 = vector.broadcast %cst_67 : f32 to vector<8x128xf32>
    %313 = arith.addf %312, %311 : vector<8x128xf32>
    %314 = arith.divf %312, %313 : vector<8x128xf32>
    %315 = vector.extract_strided_slice %303 {offsets = [0, 128], sizes = [8, 128], strides = [1, 1]} : vector<8x384xf32> to vector<8x128xf32>
    %316 = vector.extract_strided_slice %306 {offsets = [0, 128], sizes = [8, 128], strides = [1, 1]} : vector<8x384xf32> to vector<8x128xf32>
    %317 = arith.addf %315, %316 : vector<8x128xf32>
    %318 = arith.negf %317 : vector<8x128xf32>
    %319 = math.exp %318 : vector<8x128xf32>
    %cst_68 = arith.constant 1.000000e+00 : f32
    %320 = vector.broadcast %cst_68 : f32 to vector<8x128xf32>
    %321 = arith.addf %320, %319 : vector<8x128xf32>
    %322 = arith.divf %320, %321 : vector<8x128xf32>
    %323 = vector.extract_strided_slice %303 {offsets = [0, 256], sizes = [8, 128], strides = [1, 1]} : vector<8x384xf32> to vector<8x128xf32>
    %324 = vector.extract_strided_slice %306 {offsets = [0, 256], sizes = [8, 128], strides = [1, 1]} : vector<8x384xf32> to vector<8x128xf32>
    %325 = vector.broadcast %11 : vector<1x128xf32> to vector<8x128xf32>
    %326 = arith.addf %324, %325 : vector<8x128xf32>
    %327 = arith.mulf %314, %326 : vector<8x128xf32>
    %328 = arith.addf %323, %327 : vector<8x128xf32>
    %329 = math.tanh %328 : vector<8x128xf32>
    %330 = arith.subf %299, %329 : vector<8x128xf32>
    %331 = arith.mulf %322, %330 : vector<8x128xf32>
    %332 = arith.addf %329, %331 : vector<8x128xf32>
    %333 = vector.broadcast %305 : vector<8x1xf32> to vector<8x128xf32>
    %334 = arith.mulf %333, %332 : vector<8x128xf32>
    %335 = arith.index_cast %301 : i32 to index
    %c0_69 = arith.constant 0 : index
    %336 = vector.load %arg7[%335, %c0_69] : memref<64x128xf32, #tpu.memory_space<vmem>>, vector<8x128xf32>
    tpu.vector_store %arg7[%335, %c0_69], %334 {strides = array<i32>} : memref<64x128xf32, #tpu.memory_space<vmem>>, vector<8x128xf32>,
    %337 = arith.subf %332, %299 : vector<8x128xf32>
    %338 = vector.broadcast %305 : vector<8x1xf32> to vector<8x128xf32>
    %339 = arith.mulf %338, %337 : vector<8x128xf32>
    %340 = arith.addf %299, %339 : vector<8x128xf32>
    %c8_i32_70 = arith.constant 8 : i32
    %c0_71 = arith.constant 0 : index
    %c0_72 = arith.constant 0 : index
    %341 = vector.load %arg8[%c0_71, %c0_72] : memref<8x128xf32, #tpu.memory_space<vmem>>, vector<8x128xf32>
    tpu.vector_store %arg8[%c0_71, %c0_72], %340 {strides = array<i32>} : memref<8x128xf32, #tpu.memory_space<vmem>>, vector<8x128xf32>,
    return
  }
  func.func @transform_0(%arg0: i32) -> (i32, i32) {
    %c0_i32 = arith.constant 0 : i32
    %c0_i32_0 = arith.constant 0 : i32
    return %arg0, %c0_i32 : i32, i32
  }
  func.func @transform_1(%arg0: i32) -> (i32, i32) {
    %c0_i32 = arith.constant 0 : i32
    %c0_i32_0 = arith.constant 0 : i32
    return %arg0, %c0_i32 : i32, i32
  }
  func.func @transform_2(%arg0: i32) -> (i32, i32) {
    %c0_i32 = arith.constant 0 : i32
    %c0_i32_0 = arith.constant 0 : i32
    %c0_i32_1 = arith.constant 0 : i32
    return %c0_i32, %c0_i32_0 : i32, i32
  }
  func.func @transform_3(%arg0: i32) -> (i32, i32) {
    %c0_i32 = arith.constant 0 : i32
    %c0_i32_0 = arith.constant 0 : i32
    %c0_i32_1 = arith.constant 0 : i32
    return %c0_i32, %c0_i32_0 : i32, i32
  }
  func.func @transform_4(%arg0: i32) -> (i32, i32) {
    %c0_i32 = arith.constant 0 : i32
    %c0_i32_0 = arith.constant 0 : i32
    %c0_i32_1 = arith.constant 0 : i32
    return %c0_i32, %c0_i32_0 : i32, i32
  }
  func.func @transform_5(%arg0: i32) -> (i32, i32) {
    %c0_i32 = arith.constant 0 : i32
    %c0_i32_0 = arith.constant 0 : i32
    %c0_i32_1 = arith.constant 0 : i32
    return %c0_i32, %c0_i32_0 : i32, i32
  }
  func.func @transform_6(%arg0: i32) -> (i32, i32) {
    %c0_i32 = arith.constant 0 : i32
    %c0_i32_0 = arith.constant 0 : i32
    return %arg0, %c0_i32 : i32, i32
  }
  func.func @transform_7(%arg0: i32) -> (i32, i32) {
    %c0_i32 = arith.constant 0 : i32
    %c0_i32_0 = arith.constant 0 : i32
    %c0_i32_1 = arith.constant 0 : i32
    return %c0_i32, %c0_i32_0 : i32, i32
  }
}

</mosaic_0001>

<bundles_post_ra>
// kernel: _encoder_forward_jit.1
= control target key start
LH: loop header
LB: loop body
LE: loop exit
PB: predicated region body
PF: predicated region fallthrough
CT: control target
= control target key end

     0   :  { %v3008_v3 = vmov 0.0   ;;  %v3009_v4 = vmov 0   ;;  %vm3011_vm0 = vmmov 0   ;;  %s3857_s2 = inlined_call_operand.vmem [shape: f32[128,384], index: 2, kind: input, shape index: {}]   ;;  %s3858_s0 = inlined_call_operand.vmem [shape: f32[64,128], index: 0, kind: input, shape index: {}]   ;;  %s3859_s3 = inlined_call_operand.vmem [shape: f32[128,384], index: 3, kind: input, shape index: {}]   ;;  %s3860_s1 = inlined_call_operand.vmem [shape: f32[64,1], index: 1, kind: input, shape index: {}]   ;;  %s3861_s4 = inlined_call_operand.vmem [shape: f32[1,384], index: 4, kind: input, shape index: {}]   ;;  %s3862_s5 = inlined_call_operand.vmem [shape: f32[1,128], index: 5, kind: input, shape index: {}]   ;;  %s3863_s6 = inlined_call_operand.vmem [shape: f32[64,128], index: 6, kind: output, shape index: {0}]   ;;  %s3864_s7 = inlined_call_operand.vmem [shape: f32[8,128], index: 7, kind: output, shape index: {1}]  }
   0x1   :  { %v39_v0 = vld [vmem:[%s3857_s2 + $0x8] sm:$0xff]  ;;  %v42_v1 = vld [vmem:[%s3857_s2 + $0x20] sm:$0xff]  ;;  %167 = vmatprep.mubr.f32.mxu0 %v3008_v3  ;;  %2926 = vset.pattern.permute.xlu0 %v3009_v4  ;;  %v41_v6 = vld [vmem:[%s3857_s2 + $0x18] sm:$0xff] }
   0x2   :  { %v38_v2 = vld [vmem:[%s3857_s2] sm:$0xff]  ;;  %v2378_v5 = vpack.c.bf16 %v42_v1, %v39_v0  ;;  %v45_v7 = vld [vmem:[%s3857_s2 + $0x38] sm:$0xff]  ;;  %v48_v8 = vld [vmem:[%s3857_s2 + $0x50] sm:$0xff]  ;;  %2927 = vset.pattern.permute.xlu1 %v3009_v4 }
   0x3   :  { %v2380_v9 = vpack.c.bf16 %v41_v6, %v38_v2  ;;  %v2382_v10 = vpack.c.bf16 %v48_v8, %v45_v7  ;;  %v44_v11 = vld [vmem:[%s3857_s2 + $0x30] sm:$0xff]  ;;  %v47_v12 = vld [vmem:[%s3857_s2 + $0x48] sm:$0xff]  ;;  %v54_v14 = vld [vmem:[%s3857_s2 + $0x80] sm:$0xff] }
   0x4   :  { %v51_v13 = vld [vmem:[%s3857_s2 + $0x68] sm:$0xff]  ;;  %2379 = vmatprep.subr.bf16.mxu0 %v2378_v5  ;;  %v2384_v15 = vpack.c.bf16 %v47_v12, %v44_v11  ;;  %v50_v17 = vld [vmem:[%s3857_s2 + $0x60] sm:$0xff]  ;;  %v53_v18 = vld [vmem:[%s3857_s2 + $0x78] sm:$0xff] }
   0x5   :  { %2381 = vmatpush1.bf16.msra.mxu0 %v2380_v9  ;;  %v2386_v16 = vpack.c.bf16 %v54_v14, %v51_v13  ;;  %v57_v19 = vld [vmem:[%s3857_s2 + $0x98] sm:$0xff]  ;;  %v60_v20 = vld [vmem:[%s3857_s2 + $0xb0] sm:$0xff]  ;;  %v2388_v21 = vpack.c.bf16 %v53_v18, %v50_v17  ;;  %v59_v24 = vld [vmem:[%s3857_s2 + $0xa8] sm:$0xff] }
   0x6   :  { %2383 = vmatprep.subr.bf16.mxu0 %v2382_v10  ;;  %v56_v22 = vld [vmem:[%s3857_s2 + $0x90] sm:$0xff]  ;;  %v2390_v23 = vpack.c.bf16 %v60_v20, %v57_v19  ;;  %v43_v26 = vld [vmem:[%s3857_s2 + $0x28] sm:$0xff]  ;;  %v66_v28 = vld [vmem:[%s3857_s2 + $0xe0] sm:$0xff] }
   0x7   :  { %v40_v25 = vld [vmem:[%s3857_s2 + $0x10] sm:$0xff]  ;;  %v63_v27 = vld [vmem:[%s3857_s2 + $0xc8] sm:$0xff]  ;;  %v46_v30 = vld [vmem:[%s3857_s2 + $0x40] sm:$0xff]  ;;  %v2392_v32 = vpack.c.bf16 %v59_v24, %v56_v22 }
   0x8   :  { %v2410_v29 = vpack.c.bf16 %v43_v26, %v40_v25  ;;  %v49_v31 = vld [vmem:[%s3857_s2 + $0x58] sm:$0xff]  ;;  %v62_v33 = vld [vmem:[%s3857_s2 + $0xc0] sm:$0xff]  ;;  %v2394_v35 = vpack.c.bf16 %v66_v28, %v63_v27  ;;  %v52_v38 = vld [vmem:[%s3857_s2 + $0x70] sm:$0xff] }
   0x9   :  { %2385 = vmatpush1.bf16.msra.mxu0 %v2384_v15  ;;  %v2414_v34 = vpack.c.bf16 %v49_v31, %v46_v30  ;;  %v65_v36 = vld [vmem:[%s3857_s2 + $0xd8] sm:$0xff]  ;;  %v3128_v37 = vld [vmem:[%s3858_s0] sm:$0xff]  ;;  %v72_v40 = vld [vmem:[%s3857_s2 + $0x110] sm:$0xff] }
   0xa   :  { %2387 = vmatprep.subr.bf16.mxu0 %v2386_v16  ;;  %2411 = vmatprep.subr.bf16.mxu1 %v2410_v29  ;;  %v69_v39 = vld [vmem:[%s3857_s2 + $0xf8] sm:$0xff]  ;;  %v55_v41 = vld [vmem:[%s3857_s2 + $0x88] sm:$0xff]  ;;  %v2396_v43 = vpack.c.bf16 %v65_v36, %v62_v33  ;;  %v58_v44 = vld [vmem:[%s3857_s2 + $0xa0] sm:$0xff] }
   0xb   :  { %2413 = vmatpush3.bf16.msra.mxu1 %v2410_v29  ;;  %2086 = vmatprep.mubr.f32.mxu1 %v3128_v37  ;;  %v2418_v42 = vpack.c.bf16 %v55_v41, %v52_v38  ;;  %v61_v45 = vld [vmem:[%s3857_s2 + $0xb8] sm:$0xff]  ;;  %v2398_v46 = vpack.c.bf16 %v72_v40, %v69_v39  ;;  %v68_v47 = vld [vmem:[%s3857_s2 + $0xf0] sm:$0xff]  ;;  %v71_v48 = vld [vmem:[%s3857_s2 + $0x108] sm:$0xff] }
   0xc   :  { %2415 = vmatprep.subr.bf16.mxu1 %v2414_v34  ;;  %v75_v49 = vld [vmem:[%s3857_s2 + $0x128] sm:$0xff]  ;;  %v78_v50 = vld [vmem:[%s3857_s2 + $0x140] sm:$0xff]  ;;  %v2422_v51 = vpack.c.bf16 %v61_v45, %v58_v44  ;;  %v64_v52 = vld [vmem:[%s3857_s2 + $0xd0] sm:$0xff]  ;;  %v2400_v54 = vpack.c.bf16 %v71_v48, %v68_v47  ;;  %v3010_v44 = vmov 0.0|0.0  }
   0xd   :  { %2389 = vmatpush1.bf16.msra.mxu0 %v2388_v21  ;;  %v67_v53 = vld [vmem:[%s3857_s2 + $0xe8] sm:$0xff]  ;;  %v2402_v55 = vpack.c.bf16 %v78_v50, %v75_v49  ;;  %v74_v56 = vld [vmem:[%s3857_s2 + $0x120] sm:$0xff]  ;;  %v77_v57 = vld [vmem:[%s3857_s2 + $0x138] sm:$0xff] }
   0xe   :  { %2391 = vmatprep.subr.bf16.mxu0 %v2390_v23  ;;  %v81_v58 = vld [vmem:[%s3857_s2 + $0x158] sm:$0xff]  ;;  %v84_v59 = vld [vmem:[%s3857_s2 + $0x170] sm:$0xff]  ;;  %v2426_v60 = vpack.c.bf16 %v67_v53, %v64_v52  ;;  %v70_v61 = vld [vmem:[%s3857_s2 + $0x100] sm:$0xff]  ;;  %v2404_v63 = vpack.c.bf16 %v77_v57, %v74_v56 }
   0xf   :  { %2417 = vmatpush3.bf16.msra.mxu1 %v2414_v34  ;;  %v73_v62 = vld [vmem:[%s3857_s2 + $0x118] sm:$0xff]  ;;  %v2406_v0 = vpack.c.bf16 %v84_v59, %v81_v58  ;;  %v80_v1 = vld [vmem:[%s3857_s2 + $0x150] sm:$0xff]  ;;  %v83_v2 = vld [vmem:[%s3857_s2 + $0x168] sm:$0xff] }
  0x10   :  { %2419 = vmatprep.subr.bf16.mxu1 %v2418_v42  ;;  %v346_v4 = vld [vmem:[%s3859_s3 + $0x8] sm:$0xff]  ;;  %v349_v5 = vld [vmem:[%s3859_s3 + $0x20] sm:$0xff]  ;;  %v2430_v6 = vpack.c.bf16 %v73_v62, %v70_v61  ;;  %v76_v7 = vld [vmem:[%s3857_s2 + $0x130] sm:$0xff]  ;;  %v2408_v9 = vpack.c.bf16 %v83_v2, %v80_v1 }
  0x11   :  { %2393 = vmatpush1.bf16.msra.mxu0 %v2392_v32  ;;  %v79_v8 = vld [vmem:[%s3857_s2 + $0x148] sm:$0xff]  ;;  %v3203_v10 = vpack.c.bf16 %v349_v5, %v346_v4  ;;  %v345_v11 = vld [vmem:[%s3859_s3] sm:$0xff]  ;;  %v348_v12 = vld [vmem:[%s3859_s3 + $0x18] sm:$0xff] }
  0x12   :  { %2395 = vmatprep.subr.bf16.mxu0 %v2394_v35  ;;  %v352_v13 = vld [vmem:[%s3859_s3 + $0x38] sm:$0xff]  ;;  %v355_v14 = vld [vmem:[%s3859_s3 + $0x50] sm:$0xff]  ;;  %v2434_v15 = vpack.c.bf16 %v79_v8, %v76_v7  ;;  %v82_v16 = vld [vmem:[%s3857_s2 + $0x160] sm:$0xff]  ;;  %v3223_v18 = vpack.c.bf16 %v348_v12, %v345_v11 }
  0x13   :  { %2421 = vmatpush3.bf16.msra.mxu1 %v2418_v42  ;;  %v85_v17 = vld [vmem:[%s3857_s2 + $0x178] sm:$0xff]  ;;  %v3226_v19 = vpack.c.bf16 %v355_v14, %v352_v13  ;;  %v351_v20 = vld [vmem:[%s3859_s3 + $0x30] sm:$0xff]  ;;  %v354_v21 = vld [vmem:[%s3859_s3 + $0x48] sm:$0xff] }
  0x14   :  { %2423 = vmatprep.subr.bf16.mxu1 %v2422_v51  ;;  %v358_v22 = vld [vmem:[%s3859_s3 + $0x68] sm:$0xff]  ;;  %v361_v23 = vld [vmem:[%s3859_s3 + $0x80] sm:$0xff]  ;;  %v2438_v24 = vpack.c.bf16 %v85_v17, %v82_v16  ;;  %v3249_v27 = vpack.c.bf16 %v354_v21, %v351_v20  ;;  %v360_v31 = vld [vmem:[%s3859_s3 + $0x78] sm:$0xff] }
  0x15   :  { %2397 = vmatpush1.bf16.msra.mxu0 %v2396_v43  ;;  %v401_v25 = vld [vmem:[%s3860_s1] sm:$0xff]  ;;  %v31_v26 = vld [vmem:[%s3858_s0 + $0x8] sm:$0xff]  ;;  %v3255_v29 = vpack.c.bf16 %v361_v23, %v358_v22  ;;  %v364_v32 = vld [vmem:[%s3859_s3 + $0x98] sm:$0xff] }
  0x16   :  { %2399 = vmatprep.subr.bf16.mxu0 %v2398_v46  ;;  %572 = vperm.xlu0 %2926, %v401_v25   ;;  %v1866_v28 = vld [vmem:[%s3860_s1 + $0x8] sm:$0xff]  ;;  %v357_v30 = vld [vmem:[%s3859_s3 + $0x60] sm:$0xff]  ;;  %v367_v33 = vld [vmem:[%s3859_s3 + $0xb0] sm:$0xff] }
  0x17   :  { %2425 = vmatpush3.bf16.msra.mxu1 %v2422_v51  ;;  %v347_v34 = vld [vmem:[%s3859_s3 + $0x10] sm:$0xff]  ;;  %v350_v35 = vld [vmem:[%s3859_s3 + $0x28] sm:$0xff]  ;;  %v1878_v38 = vld [vmem:[%s3860_s1 + $0x20] sm:$0xff]  ;;  %v3286_v39 = vpack.c.bf16 %v367_v33, %v364_v32 }
  0x18   :  { %2427 = vmatprep.subr.bf16.mxu1 %v2426_v60  ;;  %v32_v36 = vld [vmem:[%s3858_s0 + $0x10] sm:$0xff]  ;;  %v366_v41 = vld [vmem:[%s3859_s3 + $0xa8] sm:$0xff]  ;;  %v373_v43 = vld [vmem:[%s3859_s3 + $0xe0] sm:$0xff]  ;;  %v3301_v45 = vpack.c.bf16 %v350_v35, %v347_v34 }
  0x19   :  { %2401 = vmatpush1.bf16.msra.mxu0 %v2400_v54  ;;  %v363_v40 = vld [vmem:[%s3859_s3 + $0x90] sm:$0xff]  ;;  %v370_v42 = vld [vmem:[%s3859_s3 + $0xc8] sm:$0xff]  ;;  %v353_v46 = vld [vmem:[%s3859_s3 + $0x40] sm:$0xff] }
  0x1a   :  { %2403 = vmatprep.subr.bf16.mxu0 %v2402_v55  ;;  %752 = vperm.xlu0 %2926, %v1866_v28   ;;  %v356_v47 = vld [vmem:[%s3859_s3 + $0x58] sm:$0xff]  ;;  %v3314_v49 = vpack.c.bf16 %v366_v41, %v363_v40  ;;  %v3317_v50 = vpack.c.bf16 %v373_v43, %v370_v42  ;;  %v369_v51 = vld [vmem:[%s3859_s3 + $0xc0] sm:$0xff]  ;;  %v379_v54 = vld [vmem:[%s3859_s3 + $0x110] sm:$0xff]  ;;  %v88_v40 = vlaneseq }
  0x1b   :  { %2429 = vmatpush3.bf16.msra.mxu1 %v2426_v60  ;;  %v33_v48 = vld [vmem:[%s3858_s0 + $0x18] sm:$0xff]  ;;  %v3332_v55 = vpack.c.bf16 %v356_v47, %v353_v46  ;;  %v359_v56 = vld [vmem:[%s3859_s3 + $0x70] sm:$0xff]  ;;  %v362_v57 = vld [vmem:[%s3859_s3 + $0x88] sm:$0xff] }
  0x1c   :  { %2431 = vmatprep.subr.bf16.mxu1 %v2430_v6  ;;  %v372_v52 = vld [vmem:[%s3859_s3 + $0xd8] sm:$0xff]  ;;  %v34_v58 = vld [vmem:[%s3858_s0 + $0x20] sm:$0xff]  ;;  %v375_v61 = vld [vmem:[%s3859_s3 + $0xf0] sm:$0xff]  ;;  %v3364_v1 = vpack.c.bf16 %v362_v57, %v359_v56  ;;  %v89_v41 = vshrl.u32 %v88_v40, 7 }
  0x1d   :  { %2405 = vmatpush1.bf16.msra.mxu0 %v2404_v63  ;;  %v376_v53 = vld [vmem:[%s3859_s3 + $0xf8] sm:$0xff]  ;;  %v3346_v59 = vpack.c.bf16 %v372_v52, %v369_v51  ;;  %v378_v62 = vld [vmem:[%s3859_s3 + $0x108] sm:$0xff]  ;;  %v365_v2 = vld [vmem:[%s3859_s3 + $0xa0] sm:$0xff] }
  0x1e   :  { %2407 = vmatprep.subr.bf16.mxu0 %v2406_v0  ;;  %1295 = vperm.xlu0 %2926, %v1878_v38   ;;  %v3349_v60 = vpack.c.bf16 %v379_v54, %v376_v53  ;;  %v382_v63 = vld [vmem:[%s3859_s3 + $0x128] sm:$0xff]  ;;  %v385_v0 = vld [vmem:[%s3859_s3 + $0x140] sm:$0xff]  ;;  %v368_v4 = vld [vmem:[%s3859_s3 + $0xb8] sm:$0xff]  ;;  %v98_v42 = vsub.s32 2, %v89_v41 }
  0x1f   :  { %2433 = vmatpush3.bf16.msra.mxu1 %v2430_v6  ;;  %v35_v5 = vld [vmem:[%s3858_s0 + $0x28] sm:$0xff]  ;;  %v3378_v6 = vpack.c.bf16 %v378_v62, %v375_v61  ;;  %v36_v7 = vld [vmem:[%s3858_s0 + $0x30] sm:$0xff]  ;;  %v3384_v8 = vpack.c.bf16 %v385_v0, %v382_v63  ;;  %v384_v11 = vld [vmem:[%s3859_s3 + $0x138] sm:$0xff]  ;;  %v3399_v14 = vpack.c.bf16 %v368_v4, %v365_v2 }
  0x20   :  { %2435 = vmatprep.subr.bf16.mxu1 %v2434_v15  ;;  %v388_v12 = vld [vmem:[%s3859_s3 + $0x158] sm:$0xff]  ;;  %v391_v13 = vld [vmem:[%s3859_s3 + $0x170] sm:$0xff]  ;;  %v374_v16 = vld [vmem:[%s3859_s3 + $0xe8] sm:$0xff] }
  0x21   :  { %2409 = vmatpush1.bf16.msra.mxu0 %v2408_v9  ;;  %v381_v9 = vld [vmem:[%s3859_s3 + $0x120] sm:$0xff]  ;;  %v37_v20 = vld [vmem:[%s3858_s0 + $0x38] sm:$0xff]  ;;  %v3416_v21 = vpack.c.bf16 %v391_v13, %v388_v12  ;;  %v387_v22 = vld [vmem:[%s3859_s3 + $0x150] sm:$0xff]  ;;  %v94_v12 = vsub.s32 1, %v89_v41 }
  0x22   :  { %2443 = vmatprep.subr.bf16.mxu0 %v3203_v10  ;;  %v3410_v17 = vpack.c.bf16 %v384_v11, %v381_v9  ;;  %v390_v23 = vld [vmem:[%s3859_s3 + $0x168] sm:$0xff]  ;;  %v1886_v25 = vld [vmem:[%s3860_s1 + $0x30] sm:$0xff]  ;;  %v380_v28 = vld [vmem:[%s3859_s3 + $0x118] sm:$0xff] }
  0x23   :  { %2437 = vmatpush3.bf16.msra.mxu1 %v2434_v15  ;;  %v371_v15 = vld [vmem:[%s3859_s3 + $0xd0] sm:$0xff]  ;;  %1657 = vperm.xlu0 %2926, %v1886_v25   ;;  %v386_v33 = vld [vmem:[%s3859_s3 + $0x148] sm:$0xff]  ;;  %v389_v35 = vld [vmem:[%s3859_s3 + $0x160] sm:$0xff] }
  0x24   :  { %168 = vmatmul.mubr.f32.vlgmr.msra.gmra.mrb[0].mxu0 %v3128_v37  ;;  %2439 = vmatprep.subr.bf16.mxu1 %v2438_v24  ;;  %v3280_v37 = vpack.c.bf16 %v360_v31, %v357_v30  ;;  %v3441_v30 = vpack.c.bf16 %v390_v23, %v387_v22  ;;  %v383_v32 = vld [vmem:[%s3859_s3 + $0x130] sm:$0xff]  ;;  %v86_v43 = vld [vmem:[%s3861_s4] sm:$0x7] }
  0x25   :  { %2445 = vmatpush1.bf16.msra.mxu0 %v3223_v18  ;;  %173 = vmatprep.mubr.f32.mxu0 %v3008_v3  ;;  %v3458_v34 = vpack.c.bf16 %v386_v33, %v383_v32  ;;  %v99_v46 = vrot.slane %v86_v43, %v98_v42  ;;  %v3536_v32 = vld [vmem:[%s3862_s5] ss:$0 sm:$0xff] }
  0x26   :  { %2447 = vmatprep.subr.bf16.mxu0 %v3226_v19 }
  0x27   :  { %2441 = vmatpush3.bf16.msra.mxu1 %v2438_v24  ;;  %v3425_v24 = vpack.c.bf16 %v374_v16, %v371_v15  ;;  %v3530_v16 = vrot.slane %v86_v43, %v94_v12 }
  0x28   :  { %174 = vmatmul.mubr.f32.gmra.mrb[2].mxu0 %v31_v26  ;;  %2474 = vmatprep.subr.bf16.mxu1 %v3010_v44 }
  0x29   :  { %2449 = vmatpush1.bf16.msra.mxu0 %v3249_v27  ;;  %179 = vmatprep.mubr.f32.mxu0 %v3008_v3 }
  0x2a   :  { %2451 = vmatprep.subr.bf16.mxu0 %v3255_v29  ;;  %2087 = vmatmul.mubr.f32.vlgmr.msra.gmra.mrb[0].mxu1 %v31_v26  ;;  %v377_v26 = vld [vmem:[%s3859_s3 + $0x100] sm:$0xff] }
  0x2b   :  { %2476 = vmatpush3.bf16.msra.mxu1 %v3301_v45  ;;  %2089 = vmatprep.mubr.f32.mxu1 %v32_v36  ;;  %v3445_v31 = vpack.c.bf16 %v380_v28, %v377_v26 }
  0x2c   :  { %180 = vmatmul.mubr.f32.gmra.mrb[4].mxu0 %v32_v36  ;;  %2477 = vmatprep.subr.bf16.mxu1 %v3010_v44  ;;  %v392_v36 = vld [vmem:[%s3859_s3 + $0x178] sm:$0xff] }
  0x2d   :  { %2453 = vmatpush1.bf16.msra.mxu0 %v3280_v37  ;;  %185 = vmatprep.mubr.f32.mxu0 %v3008_v3  ;;  %v3472_v38 = vpack.c.bf16 %v392_v36, %v389_v35 }
  0x2e   :  { %2455 = vmatprep.subr.bf16.mxu0 %v3286_v39  ;;  %2090 = vmatmul.mubr.f32.gmra.mrb[2].mxu1 %v33_v48 }
  0x2f   :  { %2479 = vmatpush3.bf16.msra.mxu1 %v3332_v55  ;;  %2092 = vmatprep.mubr.f32.mxu1 %v34_v58 }
  0x30   :  { %186 = vmatmul.mubr.f32.gmra.mrb[6].mxu0 %v33_v48  ;;  %2480 = vmatprep.subr.bf16.mxu1 %v3010_v44 }
  0x31   :  { %2457 = vmatpush1.bf16.msra.mxu0 %v3314_v49  ;;  %191 = vmatprep.mubr.f32.mxu0 %v3008_v3 }
  0x32   :  { %2459 = vmatprep.subr.bf16.mxu0 %v3317_v50  ;;  %2093 = vmatmul.mubr.f32.gmra.mrb[4].mxu1 %v35_v5 }
  0x33   :  { %2482 = vmatpush3.bf16.msra.mxu1 %v3364_v1  ;;  %2095 = vmatprep.mubr.f32.mxu1 %v36_v7 }
  0x34   :  { %192 = vmatmul.mubr.f32.gmra.mrb[8].mxu0 %v34_v58  ;;  %2483 = vmatprep.subr.bf16.mxu1 %v3010_v44 }
  0x35   :  { %2461 = vmatpush1.bf16.msra.mxu0 %v3346_v59  ;;  %197 = vmatprep.mubr.f32.mxu0 %v3008_v3 }
  0x36   :  { %2463 = vmatprep.subr.bf16.mxu0 %v3349_v60  ;;  %2096 = vmatmul.mubr.f32.gmra.mrb[6].mxu1 %v37_v20 }
  0x37   :  { %2485 = vmatpush3.bf16.msra.mxu1 %v3399_v14  ;;  %2130 = vmatprep.mubr.msk.f32.mxu1 %vm3011_vm0, %v3008_v3 }
  0x38   :  { %198 = vmatmul.mubr.f32.gmra.mrb[10].mxu0 %v35_v5  ;;  %2486 = vmatprep.subr.bf16.mxu1 %v3010_v44  ;;  %v90_v5 = vsub.s32 0, %v89_v41 }
  0x39   :  { %2465 = vmatpush1.bf16.msra.mxu0 %v3378_v6  ;;  %203 = vmatprep.mubr.f32.mxu0 %v3008_v3 }
  0x3a   :  { %2467 = vmatprep.subr.bf16.mxu0 %v3384_v8 }
  0x3b   :  { %2488 = vmatpush3.bf16.msra.mxu1 %v3425_v24 }
  0x3c   :  { %204 = vmatmul.mubr.f32.gmra.mrb[12].mxu0 %v36_v7  ;;  %2489 = vmatprep.subr.bf16.mxu1 %v3010_v44  ;;  %v3527_v7 = vrot.slane %v86_v43, %v90_v5  ;;  %v1882_v5 = vld [vmem:[%s3860_s1 + $0x28] sm:$0xff] }
  0x3d   :  { %2469 = vmatpush1.bf16.msra.mxu0 %v3410_v17  ;;  %209 = vmatprep.mubr.f32.mxu0 %v3008_v3 }
  0x3e   :  { %2471 = vmatprep.subr.bf16.mxu0 %v3416_v21 }
  0x3f   :  { %2491 = vmatpush3.bf16.msra.mxu1 %v3445_v31 }
  0x40   :  { %210 = vmatmul.mubr.f32.gmra.mrb[14].mxu0 %v37_v20  ;;  %2492 = vmatprep.subr.bf16.mxu1 %v3010_v44 }
  0x41   :  { %2473 = vmatpush1.bf16.msra.mxu0 %v3441_v30  ;;  %466 = vmatprep.mubr.f32.mxu0 %v3008_v3 }
  0x42   :  { %2499 = vmatprep.subr.bf16.mxu0 %v3203_v10 }
  0x43   :  { %2494 = vmatpush3.bf16.msra.mxu1 %v3458_v34 }
  0x44   :  { %467 = vmatmul.mubr.f32.vlgmr.msra.gmra.mrb[0].mxu0 %v3008_v3  ;;  %2495 = vmatprep.subr.bf16.mxu1 %v3010_v44 }
  0x45   :  { %2501 = vmatpush1.bf16.msra.mxu0 %v3223_v18  ;;  %652 = vmatprep.mubr.f32.mxu0 %v3008_v3 }
  0x46   :  { %2503 = vmatprep.subr.bf16.mxu0 %v3226_v19 }
  0x47   :  { %2497 = vmatpush3.bf16.msra.mxu1 %v3472_v38 }
  0x48   :  { %2530 = vmatprep.subr.bf16.mxu1 %v3010_v44 }
  0x49   :  { %2505 = vmatpush1.bf16.msra.mxu0 %v3249_v27 }
  0x4a   :  { %2507 = vmatprep.subr.bf16.mxu0 %v3255_v29  ;;  %2131 = vmatmul.mubr.f32.vlgmr.msra.gmra.mrb[8].mxu1 %v3008_v3 }
  0x4b   :  { %2532 = vmatpush3.bf16.msra.mxu1 %v3301_v45  ;;  %2165 = vmatprep.mubr.msk.f32.mxu1 %vm3011_vm0, %v3008_v3 }
  0x4c   :  { %2533 = vmatprep.subr.bf16.mxu1 %v3010_v44 }
  0x4d   :  { %2509 = vmatpush1.bf16.msra.mxu0 %v3280_v37 }
  0x4e   :  { %2511 = vmatprep.subr.bf16.mxu0 %v3286_v39 }
  0x4f   :  { %2535 = vmatpush3.bf16.msra.mxu1 %v3332_v55 }
  0x50   :  { %2536 = vmatprep.subr.bf16.mxu1 %v3010_v44 }
  0x51   :  { %2513 = vmatpush1.bf16.msra.mxu0 %v3314_v49 }
  0x52   :  { %2515 = vmatprep.subr.bf16.mxu0 %v3317_v50 }
  0x53   :  { %2538 = vmatpush3.bf16.msra.mxu1 %v3364_v1 }
  0x54   :  { %2539 = vmatprep.subr.bf16.mxu1 %v3010_v44 }
  0x55   :  { %2517 = vmatpush1.bf16.msra.mxu0 %v3346_v59 }
  0x56   :  { %2519 = vmatprep.subr.bf16.mxu0 %v3349_v60 }
  0x57   :  { %2541 = vmatpush3.bf16.msra.mxu1 %v3399_v14 }
  0x58   :  { %2542 = vmatprep.subr.bf16.mxu1 %v3010_v44 }
  0x59   :  { %2521 = vmatpush1.bf16.msra.mxu0 %v3378_v6 }
  0x5a   :  { %2523 = vmatprep.subr.bf16.mxu0 %v3384_v8 }
  0x5b   :  { %2544 = vmatpush3.bf16.msra.mxu1 %v3425_v24 }
  0x5c   :  { %2545 = vmatprep.subr.bf16.mxu1 %v3010_v44 }
  0x5d   :  { %2525 = vmatpush1.bf16.msra.mxu0 %v3410_v17 }
  0x5e   :  { %2527 = vmatprep.subr.bf16.mxu0 %v3416_v21 }
  0x5f   :  { %2547 = vmatpush3.bf16.msra.mxu1 %v3445_v31 }
  0x60   :  { %2548 = vmatprep.subr.bf16.mxu1 %v3010_v44 }
  0x61   :  { %2529 = vmatpush1.bf16.msra.mxu0 %v3441_v30 }
  0x62   :  { %2555 = vmatprep.subr.bf16.mxu0 %v3203_v10 }
  0x63   :  { %2550 = vmatpush3.bf16.msra.mxu1 %v3458_v34 }
  0x64   :  { %2551 = vmatprep.subr.bf16.mxu1 %v3010_v44 }
  0x67   :  { %2553 = vmatpush3.bf16.msra.mxu1 %v3472_v38 }
  0x68   :  { %2586 = vmatprep.subr.bf16.mxu1 %v3010_v44 }
  0xfd   :  { %v2088_v47 = vpop.f32.mrb[0].mxu1 }
  0xfe   :  { %v3513_v48 = vadd.f32 %v2088_v47, %v99_v46  ;;  %v282_v51 = vpop.f32.mrb[1].mxu1 }
  0xff   :  { %v283_v40 = vadd.f32 %v282_v51, %v99_v46  ;;  %v1874_v51 = vld [vmem:[%s3860_s1 + $0x18] sm:$0xff] }
 0x101   :  { %v2091_v52 = vpop.f32.mrb[2].mxu1 }
 0x102   :  { %v3515_v53 = vadd.f32 %v2091_v52, %v99_v46  ;;  %v292_v54 = vpop.f32.mrb[3].mxu1 }
 0x103   :  { %v3517_v56 = vadd.f32 %v292_v54, %v99_v46 }
 0x105   :  { %v2094_v57 = vpop.f32.mrb[4].mxu1 }
 0x106   :  { %v3519_v58 = vadd.f32 %v2094_v57, %v99_v46  ;;  %v302_v61 = vpop.f32.mrb[5].mxu1 }
 0x107   :  { %v3521_v62 = vadd.f32 %v302_v61, %v99_v46 }
 0x109   :  { %v2097_v63 = vpop.f32.mrb[6].mxu1 }
 0x10a   :  { %v3523_v0 = vadd.f32 %v2097_v63, %v99_v46  ;;  %v312_v2 = vpop.f32.mrb[7].mxu1  ;;  %v573_v63 = vpop.permute.xlu0 %572 }
 0x10b   :  { %v3525_v4 = vadd.f32 %v312_v2, %v99_v46  ;;  %v1870_v46 = vld [vmem:[%s3860_s1 + $0x10] sm:$0xff] }
 0x10c   :  { %933 = vperm.xlu1 %2927, %v1870_v46  }
 0x110   :  { %1114 = vperm.xlu1 %2927, %v1874_v51  }
 0x114   :  { %1476 = vperm.xlu1 %2927, %v1882_v5  }
 0x117   :  { %v468_v9 = vpop.f32.mrb[0].mxu0 }
 0x118   :  { %v2890_v11 = vadd.f32 %v468_v9, %v3527_v7  ;;  %v470_v13 = vpop.f32.mrb[1].mxu0  ;;  %v1890_v9 = vld [vmem:[%s3860_s1 + $0x38] sm:$0xff] }
 0x119   :  { %v2891_v20 = vadd.f32 %v470_v13, %v3530_v16  ;;  %1838 = vperm.xlu1 %2927, %v1890_v9  }
 0x11a   :  { %v1863_v15 = vmul.f32 -1.442695, %v2890_v11 }
 0x11b   :  { %v1864_v25 = vmul.f32 -1.442695, %v2891_v20 }
 0x11c   :  { %2928 = vpow2.f32 %v1863_v15 }
 0x11d   :  { %v539_v22 = vpop.f32.mrb[8].mxu1  ;;  %2930 = vpow2.f32 %v1864_v25 }
 0x11e   :  { %v2132_v23 = vpop.f32.mrb[9].mxu1  ;;  %v563_v33 = vadd.f32 %v3536_v32, %v539_v22 }
 0x126   :  { %v2929_v26 = vpop.eup %2928 }
 0x127   :  { %v547_v28 = vadd.f32 1.0, %v2929_v26  ;;  %v2931_v35 = vpop.eup %2930 }
 0x128   :  { %v554_v42 = vadd.f32 1.0, %v2931_v35 }
 0x129   :  { %2932 = vrcp.f32 %v547_v28 }
 0x133   :  { %v2933_v36 = vpop.eup %2932 }
 0x134   :  { %v564_v41 = vmul.f32 %v2933_v36, %v563_v33 }
 0x136   :  { %v565_v43 = vadd.f32 %v564_v41, %v283_v40 }
 0x138   :  { %2934 = vtanh.f32 %v565_v43 }
 0x139   :  { %2936 = vrcp.f32 %v554_v42 }
 0x142   :  { %v2935_v47 = vpop.eup %2934 }
 0x143   :  { %v567_v52 = vsub.f32 0.0, %v2935_v47  ;;  %v2937_v54 = vpop.eup %2936 }
 0x145   :  { %v568_v57 = vmul.f32 %v2937_v54, %v567_v52 }
 0x147   :  { %v569_v61 = vadd.f32 %v2935_v47, %v568_v57 }
 0x149   :  { %v3539_v2 = vmul.f32 %v573_v63, %v569_v61  ;;  %v753_v61 = vpop.permute.xlu0 %752 }
 0x14b   :  { %576 = vst [vmem:[%s3863_s6] sm:$0xff] %v3539_v2  ;;  %653 = vmatmul.mubr.f32.vlgmr.msra.gmra.mrb[2].mxu0 %v3539_v2  ;;  %2166 = vmatmul.mubr.f32.vlgmr.msra.gmra.mrb[10].mxu1 %v3539_v2 }
 0x14c   :  { %2557 = vmatpush1.bf16.msra.mxu0 %v3223_v18  ;;  %2588 = vmatpush3.bf16.msra.mxu1 %v3301_v45 }
 0x14d   :  { %2559 = vmatprep.subr.bf16.mxu0 %v3226_v19  ;;  %2589 = vmatprep.subr.bf16.mxu1 %v3010_v44 }
 0x14e   :  { %833 = vmatprep.mubr.f32.mxu0 %v3008_v3  ;;  %2200 = vmatprep.mubr.msk.f32.mxu1 %vm3011_vm0, %v3008_v3 }
 0x150   :  { %2561 = vmatpush1.bf16.msra.mxu0 %v3249_v27  ;;  %2591 = vmatpush3.bf16.msra.mxu1 %v3332_v55 }
 0x151   :  { %2563 = vmatprep.subr.bf16.mxu0 %v3255_v29  ;;  %2592 = vmatprep.subr.bf16.mxu1 %v3010_v44 }
 0x154   :  { %2565 = vmatpush1.bf16.msra.mxu0 %v3280_v37  ;;  %2594 = vmatpush3.bf16.msra.mxu1 %v3364_v1 }
 0x155   :  { %2567 = vmatprep.subr.bf16.mxu0 %v3286_v39  ;;  %2595 = vmatprep.subr.bf16.mxu1 %v3010_v44 }
 0x158   :  { %2569 = vmatpush1.bf16.msra.mxu0 %v3314_v49  ;;  %2597 = vmatpush3.bf16.msra.mxu1 %v3399_v14 }
 0x159   :  { %2571 = vmatprep.subr.bf16.mxu0 %v3317_v50  ;;  %2598 = vmatprep.subr.bf16.mxu1 %v3010_v44 }
 0x15c   :  { %2573 = vmatpush1.bf16.msra.mxu0 %v3346_v59  ;;  %2600 = vmatpush3.bf16.msra.mxu1 %v3425_v24 }
 0x15d   :  { %2575 = vmatprep.subr.bf16.mxu0 %v3349_v60  ;;  %2601 = vmatprep.subr.bf16.mxu1 %v3010_v44 }
 0x160   :  { %2577 = vmatpush1.bf16.msra.mxu0 %v3378_v6  ;;  %2603 = vmatpush3.bf16.msra.mxu1 %v3445_v31 }
 0x161   :  { %2579 = vmatprep.subr.bf16.mxu0 %v3384_v8  ;;  %2604 = vmatprep.subr.bf16.mxu1 %v3010_v44 }
 0x164   :  { %2581 = vmatpush1.bf16.msra.mxu0 %v3410_v17  ;;  %2606 = vmatpush3.bf16.msra.mxu1 %v3458_v34 }
 0x165   :  { %2583 = vmatprep.subr.bf16.mxu0 %v3416_v21  ;;  %2607 = vmatprep.subr.bf16.mxu1 %v3010_v44 }
 0x168   :  { %2585 = vmatpush1.bf16.msra.mxu0 %v3441_v30  ;;  %2609 = vmatpush3.bf16.msra.mxu1 %v3472_v38 }
 0x169   :  { %2611 = vmatprep.subr.bf16.mxu0 %v3203_v10  ;;  %2642 = vmatprep.subr.bf16.mxu1 %v3010_v44 }
 0x21e   :  { %v654_v11 = vpop.f32.mrb[2].mxu0  ;;  %v725_v12 = vpop.f32.mrb[10].mxu1 }
 0x21f   :  { %v2892_v13 = vadd.f32 %v654_v11, %v3527_v7  ;;  %v656_v15 = vpop.f32.mrb[3].mxu0  ;;  %v2167_v20 = vpop.f32.mrb[11].mxu1  ;;  %v743_v35 = vadd.f32 %v3536_v32, %v725_v12 }
 0x220   :  { %v2893_v23 = vadd.f32 %v656_v15, %v3530_v16 }
 0x221   :  { %v1867_v22 = vmul.f32 -1.442695, %v2892_v13 }
 0x222   :  { %v1868_v25 = vmul.f32 -1.442695, %v2893_v23 }
 0x223   :  { %2938 = vpow2.f32 %v1867_v22 }
 0x224   :  { %2940 = vpow2.f32 %v1868_v25 }
 0x22d   :  { %v2939_v26 = vpop.eup %2938 }
 0x22e   :  { %v733_v28 = vadd.f32 1.0, %v2939_v26  ;;  %v2941_v33 = vpop.eup %2940 }
 0x22f   :  { %v740_v42 = vadd.f32 1.0, %v2941_v33 }
 0x230   :  { %2942 = vrcp.f32 %v733_v28 }
 0x23a   :  { %v2943_v36 = vpop.eup %2942 }
 0x23b   :  { %v744_v40 = vmul.f32 %v2943_v36, %v743_v35 }
 0x23d   :  { %v745_v41 = vadd.f32 %v744_v40, %v3513_v48 }
 0x23f   :  { %2944 = vtanh.f32 %v745_v41 }
 0x240   :  { %2946 = vrcp.f32 %v740_v42 }
 0x249   :  { %v2945_v43 = vpop.eup %2944 }
 0x24a   :  { %v747_v47 = vsub.f32 %v3539_v2, %v2945_v43  ;;  %v2947_v52 = vpop.eup %2946 }
 0x24c   :  { %v748_v54 = vmul.f32 %v2947_v52, %v747_v47  ;;  %v934_v52 = vpop.permute.xlu1 %933 }
 0x24e   :  { %v749_v57 = vadd.f32 %v2945_v43, %v748_v54 }
 0x250   :  { %v755_v63 = vmul.f32 %v753_v61, %v749_v57  ;;  %v758_v46 = vsub.f32 %v749_v57, %v3539_v2 }
 0x252   :  { %1869 = vst [vmem:[%s3863_s6 + $0x8] sm:$0xff] %v755_v63  ;;  %v759_v51 = vmul.f32 %v758_v46, %v753_v61 }
 0x254   :  { %v3604_v48 = vadd.f32 %v759_v51, %v3539_v2 }
 0x256   :  { %834 = vmatmul.mubr.f32.vlgmr.msra.gmra.mrb[4].mxu0 %v3604_v48  ;;  %2201 = vmatmul.mubr.f32.vlgmr.msra.gmra.mrb[12].mxu1 %v3604_v48 }
 0x257   :  { %2613 = vmatpush1.bf16.msra.mxu0 %v3223_v18  ;;  %2644 = vmatpush3.bf16.msra.mxu1 %v3301_v45 }
 0x258   :  { %2615 = vmatprep.subr.bf16.mxu0 %v3226_v19  ;;  %2645 = vmatprep.subr.bf16.mxu1 %v3010_v44 }
 0x259   :  { %1014 = vmatprep.mubr.f32.mxu0 %v3008_v3  ;;  %2235 = vmatprep.mubr.msk.f32.mxu1 %vm3011_vm0, %v3008_v3 }
 0x25b   :  { %2617 = vmatpush1.bf16.msra.mxu0 %v3249_v27  ;;  %2647 = vmatpush3.bf16.msra.mxu1 %v3332_v55 }
 0x25c   :  { %2619 = vmatprep.subr.bf16.mxu0 %v3255_v29  ;;  %2648 = vmatprep.subr.bf16.mxu1 %v3010_v44 }
 0x25f   :  { %2621 = vmatpush1.bf16.msra.mxu0 %v3280_v37  ;;  %2650 = vmatpush3.bf16.msra.mxu1 %v3364_v1 }
 0x260   :  { %2623 = vmatprep.subr.bf16.mxu0 %v3286_v39  ;;  %2651 = vmatprep.subr.bf16.mxu1 %v3010_v44 }
 0x263   :  { %2625 = vmatpush1.bf16.msra.mxu0 %v3314_v49  ;;  %2653 = vmatpush3.bf16.msra.mxu1 %v3399_v14 }
 0x264   :  { %2627 = vmatprep.subr.bf16.mxu0 %v3317_v50  ;;  %2654 = vmatprep.subr.bf16.mxu1 %v3010_v44 }
 0x267   :  { %2629 = vmatpush1.bf16.msra.mxu0 %v3346_v59  ;;  %2656 = vmatpush3.bf16.msra.mxu1 %v3425_v24 }
 0x268   :  { %2631 = vmatprep.subr.bf16.mxu0 %v3349_v60  ;;  %2657 = vmatprep.subr.bf16.mxu1 %v3010_v44 }
 0x26b   :  { %2633 = vmatpush1.bf16.msra.mxu0 %v3378_v6  ;;  %2659 = vmatpush3.bf16.msra.mxu1 %v3445_v31 }
 0x26c   :  { %2635 = vmatprep.subr.bf16.mxu0 %v3384_v8  ;;  %2660 = vmatprep.subr.bf16.mxu1 %v3010_v44 }
 0x26f   :  { %2637 = vmatpush1.bf16.msra.mxu0 %v3410_v17  ;;  %2662 = vmatpush3.bf16.msra.mxu1 %v3458_v34 }
 0x270   :  { %2639 = vmatprep.subr.bf16.mxu0 %v3416_v21  ;;  %2663 = vmatprep.subr.bf16.mxu1 %v3010_v44 }
 0x273   :  { %2641 = vmatpush1.bf16.msra.mxu0 %v3441_v30  ;;  %2665 = vmatpush3.bf16.msra.mxu1 %v3472_v38 }
 0x274   :  { %2667 = vmatprep.subr.bf16.mxu0 %v3203_v10  ;;  %2698 = vmatprep.subr.bf16.mxu1 %v3010_v44 }
 0x329   :  { %v835_v2 = vpop.f32.mrb[4].mxu0  ;;  %v906_v5 = vpop.f32.mrb[12].mxu1 }
 0x32a   :  { %v2894_v9 = vadd.f32 %v835_v2, %v3527_v7  ;;  %v837_v11 = vpop.f32.mrb[5].mxu0  ;;  %v2202_v12 = vpop.f32.mrb[13].mxu1  ;;  %v924_v26 = vadd.f32 %v3536_v32, %v906_v5 }
 0x32b   :  { %v2895_v15 = vadd.f32 %v837_v11, %v3530_v16 }
 0x32c   :  { %v1871_v13 = vmul.f32 -1.442695, %v2894_v9 }
 0x32d   :  { %v1872_v20 = vmul.f32 -1.442695, %v2895_v15 }
 0x32e   :  { %2948 = vpow2.f32 %v1871_v13 }
 0x32f   :  { %2950 = vpow2.f32 %v1872_v20 }
 0x338   :  { %v2949_v22 = vpop.eup %2948 }
 0x339   :  { %v914_v23 = vadd.f32 1.0, %v2949_v22  ;;  %v2951_v25 = vpop.eup %2950 }
 0x33a   :  { %v921_v36 = vadd.f32 1.0, %v2951_v25 }
 0x33b   :  { %2952 = vrcp.f32 %v914_v23 }
 0x345   :  { %v2953_v28 = vpop.eup %2952 }
 0x346   :  { %v925_v33 = vmul.f32 %v2953_v28, %v924_v26 }
 0x348   :  { %v926_v35 = vadd.f32 %v925_v33, %v3517_v56 }
 0x34a   :  { %2954 = vtanh.f32 %v926_v35 }
 0x34b   :  { %2956 = vrcp.f32 %v921_v36 }
 0x354   :  { %v2955_v40 = vpop.eup %2954 }
 0x355   :  { %v928_v41 = vsub.f32 %v3604_v48, %v2955_v40  ;;  %v2957_v42 = vpop.eup %2956 }
 0x357   :  { %v929_v43 = vmul.f32 %v2957_v42, %v928_v41  ;;  %v1115_v41 = vpop.permute.xlu1 %1114 }
 0x359   :  { %v930_v47 = vadd.f32 %v2955_v40, %v929_v43 }
 0x35b   :  { %v936_v54 = vmul.f32 %v934_v52, %v930_v47  ;;  %v939_v57 = vsub.f32 %v930_v47, %v3604_v48 }
 0x35d   :  { %1873 = vst [vmem:[%s3863_s6 + $0x10] sm:$0xff] %v936_v54  ;;  %v940_v61 = vmul.f32 %v939_v57, %v934_v52 }
 0x35f   :  { %v3653_v56 = vadd.f32 %v940_v61, %v3604_v48 }
 0x361   :  { %1015 = vmatmul.mubr.f32.vlgmr.msra.gmra.mrb[6].mxu0 %v3653_v56  ;;  %2236 = vmatmul.mubr.f32.vlgmr.msra.gmra.mrb[14].mxu1 %v3653_v56 }
 0x362   :  { %2669 = vmatpush1.bf16.msra.mxu0 %v3223_v18  ;;  %2700 = vmatpush3.bf16.msra.mxu1 %v3301_v45 }
 0x363   :  { %2671 = vmatprep.subr.bf16.mxu0 %v3226_v19  ;;  %2701 = vmatprep.subr.bf16.mxu1 %v3010_v44 }
 0x364   :  { %1195 = vmatprep.mubr.f32.mxu0 %v3008_v3  ;;  %2270 = vmatprep.mubr.msk.f32.mxu1 %vm3011_vm0, %v3008_v3 }
 0x366   :  { %2673 = vmatpush1.bf16.msra.mxu0 %v3249_v27  ;;  %2703 = vmatpush3.bf16.msra.mxu1 %v3332_v55 }
 0x367   :  { %2675 = vmatprep.subr.bf16.mxu0 %v3255_v29  ;;  %2704 = vmatprep.subr.bf16.mxu1 %v3010_v44 }
 0x36a   :  { %2677 = vmatpush1.bf16.msra.mxu0 %v3280_v37  ;;  %2706 = vmatpush3.bf16.msra.mxu1 %v3364_v1 }
 0x36b   :  { %2679 = vmatprep.subr.bf16.mxu0 %v3286_v39  ;;  %2707 = vmatprep.subr.bf16.mxu1 %v3010_v44 }
 0x36e   :  { %2681 = vmatpush1.bf16.msra.mxu0 %v3314_v49  ;;  %2709 = vmatpush3.bf16.msra.mxu1 %v3399_v14 }
 0x36f   :  { %2683 = vmatprep.subr.bf16.mxu0 %v3317_v50  ;;  %2710 = vmatprep.subr.bf16.mxu1 %v3010_v44 }
 0x372   :  { %2685 = vmatpush1.bf16.msra.mxu0 %v3346_v59  ;;  %2712 = vmatpush3.bf16.msra.mxu1 %v3425_v24 }
 0x373   :  { %2687 = vmatprep.subr.bf16.mxu0 %v3349_v60  ;;  %2713 = vmatprep.subr.bf16.mxu1 %v3010_v44 }
 0x376   :  { %2689 = vmatpush1.bf16.msra.mxu0 %v3378_v6  ;;  %2715 = vmatpush3.bf16.msra.mxu1 %v3445_v31 }
 0x377   :  { %2691 = vmatprep.subr.bf16.mxu0 %v3384_v8  ;;  %2716 = vmatprep.subr.bf16.mxu1 %v3010_v44 }
 0x37a   :  { %2693 = vmatpush1.bf16.msra.mxu0 %v3410_v17  ;;  %2718 = vmatpush3.bf16.msra.mxu1 %v3458_v34 }
 0x37b   :  { %2695 = vmatprep.subr.bf16.mxu0 %v3416_v21  ;;  %2719 = vmatprep.subr.bf16.mxu1 %v3010_v44 }
 0x37e   :  { %2697 = vmatpush1.bf16.msra.mxu0 %v3441_v30  ;;  %2721 = vmatpush3.bf16.msra.mxu1 %v3472_v38 }
 0x37f   :  { %2723 = vmatprep.subr.bf16.mxu0 %v3203_v10  ;;  %2754 = vmatprep.subr.bf16.mxu1 %v3010_v44 }
 0x434   :  { %v1016_v63 = vpop.f32.mrb[6].mxu0  ;;  %v1087_v46 = vpop.f32.mrb[14].mxu1 }
 0x435   :  { %v2896_v51 = vadd.f32 %v1016_v63, %v3527_v7  ;;  %v1018_v48 = vpop.f32.mrb[7].mxu0  ;;  %v2237_v2 = vpop.f32.mrb[15].mxu1  ;;  %v1105_v20 = vadd.f32 %v3536_v32, %v1087_v46 }
 0x436   :  { %v2897_v9 = vadd.f32 %v1018_v48, %v3530_v16 }
 0x437   :  { %v1875_v5 = vmul.f32 -1.442695, %v2896_v51 }
 0x438   :  { %v1876_v11 = vmul.f32 -1.442695, %v2897_v9 }
 0x439   :  { %2958 = vpow2.f32 %v1875_v5 }
 0x43a   :  { %2960 = vpow2.f32 %v1876_v11 }
 0x443   :  { %v2959_v12 = vpop.eup %2958 }
 0x444   :  { %v1095_v13 = vadd.f32 1.0, %v2959_v12  ;;  %v2961_v15 = vpop.eup %2960 }
 0x445   :  { %v1102_v26 = vadd.f32 1.0, %v2961_v15 }
 0x446   :  { %2962 = vrcp.f32 %v1095_v13 }
 0x450   :  { %v2963_v22 = vpop.eup %2962 }
 0x451   :  { %v1106_v23 = vmul.f32 %v2963_v22, %v1105_v20 }
 0x453   :  { %v1107_v25 = vadd.f32 %v1106_v23, %v3515_v53 }
 0x455   :  { %2964 = vtanh.f32 %v1107_v25 }
 0x456   :  { %2966 = vrcp.f32 %v1102_v26 }
 0x45f   :  { %v2965_v28 = vpop.eup %2964 }
 0x460   :  { %v1109_v33 = vsub.f32 %v3653_v56, %v2965_v28  ;;  %v2967_v35 = vpop.eup %2966 }
 0x462   :  { %v1110_v36 = vmul.f32 %v2967_v35, %v1109_v33 }
 0x464   :  { %v1111_v40 = vadd.f32 %v2965_v28, %v1110_v36  ;;  %v1296_v28 = vpop.permute.xlu0 %1295 }
 0x466   :  { %v1117_v42 = vmul.f32 %v1115_v41, %v1111_v40  ;;  %v1120_v43 = vsub.f32 %v1111_v40, %v3653_v56 }
 0x468   :  { %1877 = vst [vmem:[%s3863_s6 + $0x18] sm:$0xff] %v1117_v42  ;;  %v1121_v47 = vmul.f32 %v1120_v43, %v1115_v41 }
 0x46a   :  { %v3702_v53 = vadd.f32 %v1121_v47, %v3653_v56 }
 0x46c   :  { %1196 = vmatmul.mubr.f32.vlgmr.msra.gmra.mrb[8].mxu0 %v3702_v53  ;;  %2271 = vmatmul.mubr.f32.vlgmr.msra.gmra.mrb[16].mxu1 %v3702_v53 }
 0x46d   :  { %2725 = vmatpush1.bf16.msra.mxu0 %v3223_v18  ;;  %2756 = vmatpush3.bf16.msra.mxu1 %v3301_v45 }
 0x46e   :  { %2727 = vmatprep.subr.bf16.mxu0 %v3226_v19  ;;  %2757 = vmatprep.subr.bf16.mxu1 %v3010_v44 }
 0x46f   :  { %1376 = vmatprep.mubr.f32.mxu0 %v3008_v3  ;;  %2305 = vmatprep.mubr.msk.f32.mxu1 %vm3011_vm0, %v3008_v3 }
 0x471   :  { %2729 = vmatpush1.bf16.msra.mxu0 %v3249_v27  ;;  %2759 = vmatpush3.bf16.msra.mxu1 %v3332_v55 }
 0x472   :  { %2731 = vmatprep.subr.bf16.mxu0 %v3255_v29  ;;  %2760 = vmatprep.subr.bf16.mxu1 %v3010_v44 }
 0x475   :  { %2733 = vmatpush1.bf16.msra.mxu0 %v3280_v37  ;;  %2762 = vmatpush3.bf16.msra.mxu1 %v3364_v1 }
 0x476   :  { %2735 = vmatprep.subr.bf16.mxu0 %v3286_v39  ;;  %2763 = vmatprep.subr.bf16.mxu1 %v3010_v44 }
 0x479   :  { %2737 = vmatpush1.bf16.msra.mxu0 %v3314_v49  ;;  %2765 = vmatpush3.bf16.msra.mxu1 %v3399_v14 }
 0x47a   :  { %2739 = vmatprep.subr.bf16.mxu0 %v3317_v50  ;;  %2766 = vmatprep.subr.bf16.mxu1 %v3010_v44 }
 0x47d   :  { %2741 = vmatpush1.bf16.msra.mxu0 %v3346_v59  ;;  %2768 = vmatpush3.bf16.msra.mxu1 %v3425_v24 }
 0x47e   :  { %2743 = vmatprep.subr.bf16.mxu0 %v3349_v60  ;;  %2769 = vmatprep.subr.bf16.mxu1 %v3010_v44 }
 0x481   :  { %2745 = vmatpush1.bf16.msra.mxu0 %v3378_v6  ;;  %2771 = vmatpush3.bf16.msra.mxu1 %v3445_v31 }
 0x482   :  { %2747 = vmatprep.subr.bf16.mxu0 %v3384_v8  ;;  %2772 = vmatprep.subr.bf16.mxu1 %v3010_v44 }
 0x485   :  { %2749 = vmatpush1.bf16.msra.mxu0 %v3410_v17  ;;  %2774 = vmatpush3.bf16.msra.mxu1 %v3458_v34 }
 0x486   :  { %2751 = vmatprep.subr.bf16.mxu0 %v3416_v21  ;;  %2775 = vmatprep.subr.bf16.mxu1 %v3010_v44 }
 0x489   :  { %2753 = vmatpush1.bf16.msra.mxu0 %v3441_v30  ;;  %2777 = vmatpush3.bf16.msra.mxu1 %v3472_v38 }
 0x48a   :  { %2779 = vmatprep.subr.bf16.mxu0 %v3203_v10  ;;  %2810 = vmatprep.subr.bf16.mxu1 %v3010_v44 }
 0x53f   :  { %v1197_v52 = vpop.f32.mrb[8].mxu0  ;;  %v1268_v54 = vpop.f32.mrb[16].mxu1 }
 0x540   :  { %v2898_v57 = vadd.f32 %v1197_v52, %v3527_v7  ;;  %v1199_v61 = vpop.f32.mrb[9].mxu0  ;;  %v2272_v56 = vpop.f32.mrb[17].mxu1  ;;  %v1286_v9 = vadd.f32 %v3536_v32, %v1268_v54 }
 0x541   :  { %v2899_v46 = vadd.f32 %v1199_v61, %v3530_v16 }
 0x542   :  { %v1879_v63 = vmul.f32 -1.442695, %v2898_v57 }
 0x543   :  { %v1880_v51 = vmul.f32 -1.442695, %v2899_v46 }
 0x544   :  { %2968 = vpow2.f32 %v1879_v63 }
 0x545   :  { %2970 = vpow2.f32 %v1880_v51 }
 0x54e   :  { %v2969_v48 = vpop.eup %2968 }
 0x54f   :  { %v1276_v2 = vadd.f32 1.0, %v2969_v48  ;;  %v2971_v5 = vpop.eup %2970 }
 0x550   :  { %v1283_v15 = vadd.f32 1.0, %v2971_v5 }
 0x551   :  { %2972 = vrcp.f32 %v1276_v2 }
 0x55b   :  { %v2973_v11 = vpop.eup %2972 }
 0x55c   :  { %v1287_v12 = vmul.f32 %v2973_v11, %v1286_v9 }
 0x55e   :  { %v1288_v13 = vadd.f32 %v1287_v12, %v3521_v62 }
 0x560   :  { %2974 = vtanh.f32 %v1288_v13  ;;  %v1477_v13 = vpop.permute.xlu1 %1476 }
 0x561   :  { %2976 = vrcp.f32 %v1283_v15 }
 0x56a   :  { %v2975_v20 = vpop.eup %2974 }
 0x56b   :  { %v1290_v22 = vsub.f32 %v3702_v53, %v2975_v20  ;;  %v2977_v23 = vpop.eup %2976 }
 0x56d   :  { %v1291_v25 = vmul.f32 %v2977_v23, %v1290_v22 }
 0x56f   :  { %v1292_v26 = vadd.f32 %v2975_v20, %v1291_v25 }
 0x571   :  { %v1298_v33 = vmul.f32 %v1296_v28, %v1292_v26  ;;  %v1301_v35 = vsub.f32 %v1292_v26, %v3702_v53 }
 0x573   :  { %1881 = vst [vmem:[%s3863_s6 + $0x20] sm:$0xff] %v1298_v33  ;;  %v1302_v36 = vmul.f32 %v1301_v35, %v1296_v28 }
 0x575   :  { %v3751_v62 = vadd.f32 %v1302_v36, %v3702_v53 }
 0x577   :  { %1377 = vmatmul.mubr.f32.vlgmr.msra.gmra.mrb[10].mxu0 %v3751_v62  ;;  %2306 = vmatmul.mubr.f32.vlgmr.msra.gmra.mrb[18].mxu1 %v3751_v62 }
 0x578   :  { %2781 = vmatpush1.bf16.msra.mxu0 %v3223_v18  ;;  %2812 = vmatpush3.bf16.msra.mxu1 %v3301_v45 }
 0x579   :  { %2783 = vmatprep.subr.bf16.mxu0 %v3226_v19  ;;  %2813 = vmatprep.subr.bf16.mxu1 %v3010_v44 }
 0x57a   :  { %1557 = vmatprep.mubr.f32.mxu0 %v3008_v3  ;;  %2340 = vmatprep.mubr.msk.f32.mxu1 %vm3011_vm0, %v3008_v3 }
 0x57c   :  { %2785 = vmatpush1.bf16.msra.mxu0 %v3249_v27  ;;  %2815 = vmatpush3.bf16.msra.mxu1 %v3332_v55 }
 0x57d   :  { %2787 = vmatprep.subr.bf16.mxu0 %v3255_v29  ;;  %2816 = vmatprep.subr.bf16.mxu1 %v3010_v44 }
 0x580   :  { %2789 = vmatpush1.bf16.msra.mxu0 %v3280_v37  ;;  %2818 = vmatpush3.bf16.msra.mxu1 %v3364_v1 }
 0x581   :  { %2791 = vmatprep.subr.bf16.mxu0 %v3286_v39  ;;  %2819 = vmatprep.subr.bf16.mxu1 %v3010_v44 }
 0x584   :  { %2793 = vmatpush1.bf16.msra.mxu0 %v3314_v49  ;;  %2821 = vmatpush3.bf16.msra.mxu1 %v3399_v14 }
 0x585   :  { %2795 = vmatprep.subr.bf16.mxu0 %v3317_v50  ;;  %2822 = vmatprep.subr.bf16.mxu1 %v3010_v44 }
 0x588   :  { %2797 = vmatpush1.bf16.msra.mxu0 %v3346_v59  ;;  %2824 = vmatpush3.bf16.msra.mxu1 %v3425_v24 }
 0x589   :  { %2799 = vmatprep.subr.bf16.mxu0 %v3349_v60  ;;  %2825 = vmatprep.subr.bf16.mxu1 %v3010_v44 }
 0x58c   :  { %2801 = vmatpush1.bf16.msra.mxu0 %v3378_v6  ;;  %2827 = vmatpush3.bf16.msra.mxu1 %v3445_v31 }
 0x58d   :  { %2803 = vmatprep.subr.bf16.mxu0 %v3384_v8  ;;  %2828 = vmatprep.subr.bf16.mxu1 %v3010_v44 }
 0x590   :  { %2805 = vmatpush1.bf16.msra.mxu0 %v3410_v17  ;;  %2830 = vmatpush3.bf16.msra.mxu1 %v3458_v34 }
 0x591   :  { %2807 = vmatprep.subr.bf16.mxu0 %v3416_v21  ;;  %2831 = vmatprep.subr.bf16.mxu1 %v3010_v44 }
 0x594   :  { %2809 = vmatpush1.bf16.msra.mxu0 %v3441_v30  ;;  %2833 = vmatpush3.bf16.msra.mxu1 %v3472_v38 }
 0x595   :  { %2835 = vmatprep.subr.bf16.mxu0 %v3203_v10  ;;  %2866 = vmatprep.subr.bf16.mxu1 %v3010_v44 }
 0x64a   :  { %v1378_v40 = vpop.f32.mrb[10].mxu0  ;;  %v1449_v41 = vpop.f32.mrb[18].mxu1 }
 0x64b   :  { %v2900_v42 = vadd.f32 %v1378_v40, %v3527_v7  ;;  %v1380_v43 = vpop.f32.mrb[11].mxu0  ;;  %v2307_v47 = vpop.f32.mrb[19].mxu1  ;;  %v1467_v10 = vadd.f32 %v3536_v32, %v1449_v41 }
 0x64c   :  { %v2901_v52 = vadd.f32 %v1380_v43, %v3530_v16 }
 0x64d   :  { %v1883_v53 = vmul.f32 -1.442695, %v2900_v42 }
 0x64e   :  { %v1884_v54 = vmul.f32 -1.442695, %v2901_v52 }
 0x64f   :  { %2978 = vpow2.f32 %v1883_v53 }
 0x650   :  { %2980 = vpow2.f32 %v1884_v54 }
 0x659   :  { %v2979_v57 = vpop.eup %2978 }
 0x65a   :  { %v1457_v61 = vadd.f32 1.0, %v2979_v57  ;;  %v2981_v56 = vpop.eup %2980 }
 0x65b   :  { %v1464_v48 = vadd.f32 1.0, %v2981_v56 }
 0x65c   :  { %2982 = vrcp.f32 %v1457_v61 }
 0x666   :  { %v2983_v63 = vpop.eup %2982 }
 0x667   :  { %v1468_v46 = vmul.f32 %v2983_v63, %v1467_v10  ;;  %v1839_v10 = vpop.permute.xlu1 %1838 }
 0x669   :  { %v1469_v51 = vadd.f32 %v1468_v46, %v3519_v58 }
 0x66b   :  { %2984 = vtanh.f32 %v1469_v51 }
 0x66c   :  { %2986 = vrcp.f32 %v1464_v48 }
 0x675   :  { %v2985_v2 = vpop.eup %2984 }
 0x676   :  { %v1471_v5 = vsub.f32 %v3751_v62, %v2985_v2  ;;  %v2987_v9 = vpop.eup %2986 }
 0x678   :  { %v1472_v11 = vmul.f32 %v2987_v9, %v1471_v5 }
 0x67a   :  { %v1473_v12 = vadd.f32 %v2985_v2, %v1472_v11 }
 0x67c   :  { %v1479_v15 = vmul.f32 %v1477_v13, %v1473_v12  ;;  %v1482_v20 = vsub.f32 %v1473_v12, %v3751_v62 }
 0x67e   :  { %1885 = vst [vmem:[%s3863_s6 + $0x28] sm:$0xff] %v1479_v15  ;;  %v1483_v22 = vmul.f32 %v1482_v20, %v1477_v13 }
 0x680   :  { %v3800_v58 = vadd.f32 %v1483_v22, %v3751_v62 }
 0x682   :  { %1558 = vmatmul.mubr.f32.vlgmr.msra.gmra.mrb[12].mxu0 %v3800_v58  ;;  %2341 = vmatmul.mubr.f32.vlgmr.msra.gmra.mrb[20].mxu1 %v3800_v58 }
 0x683   :  { %2837 = vmatpush1.bf16.msra.mxu0 %v3223_v18  ;;  %2868 = vmatpush3.bf16.msra.mxu1 %v3301_v45 }
 0x684   :  { %2839 = vmatprep.subr.bf16.mxu0 %v3226_v19  ;;  %2869 = vmatprep.subr.bf16.mxu1 %v3010_v44 }
 0x685   :  { %1738 = vmatprep.mubr.f32.mxu0 %v3008_v3  ;;  %2375 = vmatprep.mubr.msk.f32.mxu1 %vm3011_vm0, %v3008_v3 }
 0x687   :  { %2841 = vmatpush1.bf16.msra.mxu0 %v3249_v27  ;;  %2871 = vmatpush3.bf16.msra.mxu1 %v3332_v55 }
 0x688   :  { %2843 = vmatprep.subr.bf16.mxu0 %v3255_v29  ;;  %2872 = vmatprep.subr.bf16.mxu1 %v3010_v44 }
 0x68b   :  { %2845 = vmatpush1.bf16.msra.mxu0 %v3280_v37  ;;  %2874 = vmatpush3.bf16.msra.mxu1 %v3364_v1 }
 0x68c   :  { %2847 = vmatprep.subr.bf16.mxu0 %v3286_v39  ;;  %2875 = vmatprep.subr.bf16.mxu1 %v3010_v44 }
 0x68f   :  { %2849 = vmatpush1.bf16.msra.mxu0 %v3314_v49  ;;  %2877 = vmatpush3.bf16.msra.mxu1 %v3399_v14 }
 0x690   :  { %2851 = vmatprep.subr.bf16.mxu0 %v3317_v50  ;;  %2878 = vmatprep.subr.bf16.mxu1 %v3010_v44 }
 0x693   :  { %2853 = vmatpush1.bf16.msra.mxu0 %v3346_v59  ;;  %2880 = vmatpush3.bf16.msra.mxu1 %v3425_v24 }
 0x694   :  { %2855 = vmatprep.subr.bf16.mxu0 %v3349_v60  ;;  %2881 = vmatprep.subr.bf16.mxu1 %v3010_v44 }
 0x697   :  { %2857 = vmatpush1.bf16.msra.mxu0 %v3378_v6  ;;  %2883 = vmatpush3.bf16.msra.mxu1 %v3445_v31 }
 0x698   :  { %2859 = vmatprep.subr.bf16.mxu0 %v3384_v8  ;;  %2884 = vmatprep.subr.bf16.mxu1 %v3010_v44 }
 0x69b   :  { %2861 = vmatpush1.bf16.msra.mxu0 %v3410_v17  ;;  %2886 = vmatpush3.bf16.msra.mxu1 %v3458_v34 }
 0x69c   :  { %2863 = vmatprep.subr.bf16.mxu0 %v3416_v21  ;;  %2887 = vmatprep.subr.bf16.mxu1 %v3010_v44 }
 0x69f   :  { %2865 = vmatpush1.bf16.msra.mxu0 %v3441_v30  ;;  %2889 = vmatpush3.bf16.msra.mxu1 %v3472_v38  ;;  %v1658_v30 = vpop.permute.xlu0 %1657 }
 0x755   :  { %v1559_v3 = vpop.f32.mrb[12].mxu0  ;;  %v1630_v18 = vpop.f32.mrb[20].mxu1 }
 0x756   :  { %v2902_v19 = vadd.f32 %v1559_v3, %v3527_v7  ;;  %v1561_v27 = vpop.f32.mrb[13].mxu0  ;;  %v2342_v29 = vpop.f32.mrb[21].mxu1  ;;  %v1648_v55 = vadd.f32 %v3536_v32, %v1630_v18 }
 0x757   :  { %v2903_v39 = vadd.f32 %v1561_v27, %v3530_v16 }
 0x758   :  { %v1887_v37 = vmul.f32 -1.442695, %v2902_v19 }
 0x759   :  { %v1888_v45 = vmul.f32 -1.442695, %v2903_v39 }
 0x75a   :  { %2988 = vpow2.f32 %v1887_v37 }
 0x75b   :  { %2990 = vpow2.f32 %v1888_v45 }
 0x764   :  { %v2989_v49 = vpop.eup %2988 }
 0x765   :  { %v1638_v50 = vadd.f32 1.0, %v2989_v49  ;;  %v2991_v44 = vpop.eup %2990 }
 0x766   :  { %v1645_v6 = vadd.f32 1.0, %v2991_v44 }
 0x767   :  { %2992 = vrcp.f32 %v1638_v50 }
 0x771   :  { %v2993_v59 = vpop.eup %2992 }
 0x772   :  { %v1649_v60 = vmul.f32 %v2993_v59, %v1648_v55 }
 0x774   :  { %v1650_v1 = vadd.f32 %v1649_v60, %v3525_v4 }
 0x776   :  { %2994 = vtanh.f32 %v1650_v1 }
 0x777   :  { %2996 = vrcp.f32 %v1645_v6 }
 0x780   :  { %v2995_v8 = vpop.eup %2994 }
 0x781   :  { %v1652_v14 = vsub.f32 %v3800_v58, %v2995_v8  ;;  %v2997_v17 = vpop.eup %2996 }
 0x783   :  { %v1653_v21 = vmul.f32 %v2997_v17, %v1652_v14 }
 0x785   :  { %v1654_v24 = vadd.f32 %v2995_v8, %v1653_v21 }
 0x787   :  { %v1660_v31 = vmul.f32 %v1658_v30, %v1654_v24  ;;  %v1663_v34 = vsub.f32 %v1654_v24, %v3800_v58 }
 0x789   :  { %1889 = vst [vmem:[%s3863_s6 + $0x30] sm:$0xff] %v1660_v31  ;;  %v1664_v38 = vmul.f32 %v1663_v34, %v1658_v30 }
 0x78b   :  { %v1665_v4 = vadd.f32 %v1664_v38, %v3800_v58 }
 0x78d   :  { %1739 = vmatmul.mubr.f32.vlgmr.msra.gmra.mrb[14].mxu0 %v1665_v4  ;;  %2376 = vmatmul.mubr.f32.vlgmr.msra.gmra.mrb[22].mxu1 %v1665_v4 }
 0x860   :  { %v1740_v23 = vpop.f32.mrb[14].mxu0  ;;  %v1811_v25 = vpop.f32.mrb[22].mxu1 }
 0x861   :  { %v2904_v26 = vadd.f32 %v1740_v23, %v3527_v7  ;;  %v1742_v28 = vpop.f32.mrb[15].mxu0  ;;  %v2377_v33 = vpop.f32.mrb[23].mxu1  ;;  %v1829_v43 = vadd.f32 %v3536_v32, %v1811_v25 }
 0x862   :  { %v2905_v36 = vadd.f32 %v1742_v28, %v3530_v16 }
 0x863   :  { %v1891_v35 = vmul.f32 -1.442695, %v2904_v26 }
 0x864   :  { %v1892_v62 = vmul.f32 -1.442695, %v2905_v36 }
 0x865   :  { %2998 = vpow2.f32 %v1891_v35 }
 0x866   :  { %3000 = vpow2.f32 %v1892_v62 }
 0x86f   :  { %v2999_v40 = vpop.eup %2998 }
 0x870   :  { %v1819_v41 = vadd.f32 1.0, %v2999_v40  ;;  %v3001_v42 = vpop.eup %3000 }
 0x871   :  { %v1826_v54 = vadd.f32 1.0, %v3001_v42 }
 0x872   :  { %3002 = vrcp.f32 %v1819_v41 }
 0x87c   :  { %v3003_v47 = vpop.eup %3002 }
 0x87d   :  { %v1830_v53 = vmul.f32 %v3003_v47, %v1829_v43 }
 0x87f   :  { %v1831_v52 = vadd.f32 %v1830_v53, %v3523_v0 }
 0x881   :  { %3004 = vtanh.f32 %v1831_v52 }
 0x882   :  { %3006 = vrcp.f32 %v1826_v54 }
 0x88b   :  { %v3005_v7 = vpop.eup %3004 }
 0x88c   :  { %v1833_v57 = vsub.f32 %v1665_v4, %v3005_v7  ;;  %v3007_v61 = vpop.eup %3006 }
 0x88e   :  { %v1834_v56 = vmul.f32 %v3007_v61, %v1833_v57 }
 0x890   :  { %v1835_v16 = vadd.f32 %v3005_v7, %v1834_v56 }
 0x892   :  { %v1841_v63 = vmul.f32 %v1839_v10, %v1835_v16  ;;  %v1844_v46 = vsub.f32 %v1835_v16, %v1665_v4 }
 0x894   :  { %1893 = vst [vmem:[%s3863_s6 + $0x38] sm:$0xff] %v1841_v63  ;;  %v1845_v32 = vmul.f32 %v1844_v46, %v1839_v10 }
 0x896   :  { %v1846_v51 = vadd.f32 %v1845_v32, %v1665_v4 }
 0x898   :  { %1847 = vst [vmem:[%s3864_s7] sm:$0xff] %v1846_v51 }

</bundles_post_ra>
